<compile_context>
chip_gen: v7x
topology: tpu7x:2x2x1
jax: 0.10.0
libtpu: 0.0.40
codegen_flags: <defaults>
</compile_context>

<pallas_src>
import functools

import jax
import jax.numpy as jnp
from jax.experimental import pallas as pl
from jax.experimental.pallas import tpu as pltpu


def _attention_kernel(x_ref, wqkv_ref, *rest, dim, num_heads, qkv_bias):
    if qkv_bias:
        bqkv_ref, wproj_ref, bproj_ref, o_ref = rest
    else:
        wproj_ref, bproj_ref, o_ref = rest

    head_dim = dim // num_heads
    bb, n, _ = x_ref.shape                                   # batch tile, seq, dim

    # ---- qkv projection ------------------------------------------------------
    # Flatten the batch tile into the sublane (M) dim: one full-width matmul,
    # bf16 operands, f32 accumulation.
    x = x_ref[...].reshape(bb * n, dim).astype(jnp.bfloat16)  # (bb*N, C) bf16
    qkv = jnp.dot(x, wqkv_ref[...],
                  preferred_element_type=jnp.float32)         # (bb*N, 3C) f32
    if qkv_bias:
        qkv = qkv + bqkv_ref[...]                             # (1, 3C) broadcast

    def to_heads(z):                       # (bb*N, C) f32 -> (bb*H, N, hd) bf16
        z = z.reshape(bb, n, num_heads, head_dim)
        z = jnp.transpose(z, (0, 2, 1, 3))
        return z.reshape(bb * num_heads, n, head_dim).astype(jnp.bfloat16)

    # softmax scale is pre-folded into the q columns of wqkv / bqkv.
    q = to_heads(qkv[:, 0:dim])
    k = to_heads(qkv[:, dim:2 * dim])
    v = to_heads(qkv[:, 2 * dim:3 * dim])

    # ---- head-batched scaled-dot-product attention ---------------------------
    # QK^T: contraction over head_dim of both operands (trans_b form; no XLU).
    s = jnp.einsum("gnd,gmd->gnm", q, k,
                   preferred_element_type=jnp.float32)        # (bb*H, N, N) f32

    # numerically-stable softmax in f32; approx reciprocal runs on the EUP.
    s = s - jnp.max(s, axis=-1, keepdims=True)
    p = jnp.exp(s)
    p = p * pl.reciprocal(jnp.sum(p, axis=-1, keepdims=True), approx=True)

    # PV: bf16 probs, f32 accumulation.
    o = jnp.einsum("gnm,gmd->gnd", p.astype(jnp.bfloat16), v,
                   preferred_element_type=jnp.float32)        # (bb*H, N, hd) f32

    # ---- merge heads + output projection -------------------------------------
    o = o.reshape(bb, num_heads, n, head_dim)
    o = jnp.transpose(o, (0, 2, 1, 3)).reshape(bb * n, dim).astype(jnp.bfloat16)
    y = jnp.dot(o, wproj_ref[...],
                preferred_element_type=jnp.float32)           # (bb*N, C) f32
    y = y + bproj_ref[...]                                    # (1, C) broadcast

    o_ref[...] = y.reshape(bb, n, dim).astype(o_ref.dtype)


def _pick_batch_tile(B, N, C, num_heads):
    """Largest divisor of B whose fused intermediates stay within a VMEM budget."""
    budget = 6 * 1024 * 1024                     # conservative (v7x has 64 MiB total)

    def cost(bb):
        g = bb * num_heads
        scores = 2 * g * N * N * 4               # f32 scores + probs
        qkv = bb * N * 3 * C * (4 + 2)           # f32 qkv + bf16 q/k/v copies
        io = 2 * 2 * bb * N * C * 4              # double-buffered x / out blocks
        return scores + qkv + io

    bb = 1
    for cand in range(1, B + 1):
        if B % cand == 0 and cost(cand) <= budget:
            bb = cand
    return bb


def attention_pallas(x, params, *, num_heads, qkv_bias=False, qk_scale=None):
    """x: (B, N, C) float32.  params: dict of weights in PyTorch layout."""
    B, N, C = x.shape
    head_dim = C // num_heads
    scale = qk_scale if qk_scale is not None else head_dim ** (-0.5)

    # PyTorch Linear: y = x @ W.T + b.  Pre-transpose so the kernel does x @ W,
    # and fold the softmax scale into the q slice:
    #   scale * (x @ Wq.T + bq) == x @ (scale * Wq.T) + scale * bq
    wqkv_t = jnp.asarray(params["qkv_w"], dtype=jnp.float32).T           # (C, 3C)
    wqkv_t = wqkv_t.at[:, :C].multiply(scale)
    wproj_t = jnp.asarray(params["proj_w"], dtype=jnp.float32).T         # (C, C)

    wqkv_bf = wqkv_t.astype(jnp.bfloat16)
    wproj_bf = wproj_t.astype(jnp.bfloat16)
    bproj = jnp.asarray(params["proj_b"], dtype=jnp.float32).reshape(1, C)

    bb = _pick_batch_tile(B, N, C, num_heads)

    inputs = [x, wqkv_bf]
    in_specs = [
        pl.BlockSpec((bb, N, C), lambda b: (b, 0, 0)),        # x (batch tile)
        pl.BlockSpec((C, 3 * C), lambda b: (0, 0)),           # qkv weight (resident)
    ]
    if qkv_bias:
        bqkv = jnp.asarray(params["qkv_b"], dtype=jnp.float32)
        bqkv = bqkv.at[:C].multiply(scale).reshape(1, 3 * C)
        inputs.append(bqkv)
        in_specs.append(pl.BlockSpec((1, 3 * C), lambda b: (0, 0)))
    # else: bias is neither passed nor DMA'd.
    inputs += [wproj_bf, bproj]
    in_specs += [
        pl.BlockSpec((C, C), lambda b: (0, 0)),               # proj weight (resident)
        pl.BlockSpec((1, C), lambda b: (0, 0)),               # proj bias
    ]

    kernel = functools.partial(
        _attention_kernel, dim=C, num_heads=num_heads, qkv_bias=qkv_bias,
    )

    return pl.pallas_call(
        kernel,
        out_shape=jax.ShapeDtypeStruct((B, N, C), x.dtype),
        grid_spec=pltpu.PrefetchScalarGridSpec(
            num_scalar_prefetch=0,
            grid=(B // bb,),
            in_specs=in_specs,
            out_specs=pl.BlockSpec((bb, N, C), lambda b: (b, 0, 0)),
        ),
        compiler_params=pltpu.CompilerParams(
            dimension_semantics=("parallel",),
        ),
    )(*inputs)


def attention_ref(x, params, *, num_heads, qkv_bias=False, qk_scale=None):
    """Pure-JAX f32 reference mirroring the PyTorch forward."""
    B, N, C = x.shape
    head_dim = C // num_heads
    scale = qk_scale if qk_scale is not None else head_dim ** (-0.5)

    qkv = x @ params["qkv_w"].T
    if qkv_bias:
        qkv = qkv + params["qkv_b"]
    qkv = qkv.reshape(B, N, 3, num_heads, head_dim).transpose(2, 0, 3, 1, 4)
    q, k, v = qkv[0], qkv[1], qkv[2]                          # (B, H, N, hd)
    attn = jnp.einsum("bhqd,bhkd->bhqk", q, k) * scale
    attn = jax.nn.softmax(attn, axis=-1)
    out = jnp.einsum("bhqk,bhkd->bhqd", attn, v)
    out = out.transpose(0, 2, 1, 3).reshape(B, N, C)
    return out @ params["proj_w"].T + params["proj_b"]


if __name__ == "__main__":
    # Small shapes consistent with the module (dim divisible by num_heads).
    B, N, C = 2, 16, 128
    num_heads = 4

    key = jax.random.PRNGKey(0)
    kx, k1, k2, k3, k4 = jax.random.split(key, 5)

    x = jax.random.normal(kx, (B, N, C), dtype=jnp.float32)
    params = {
        "qkv_w": 0.1 * jax.random.normal(k1, (3 * C, C), dtype=jnp.float32),
        "qkv_b": 0.1 * jax.random.normal(k2, (3 * C,), dtype=jnp.float32),
        "proj_w": 0.1 * jax.random.normal(k3, (C, C), dtype=jnp.float32),
        "proj_b": 0.1 * jax.random.normal(k4, (C,), dtype=jnp.float32),
    }

    # bf16 MXU operands vs f32 reference -> loosened tolerances.
    tol = dict(atol=5e-2, rtol=5e-2)

    # qkv_bias=True path
    y = attention_pallas(x, params, num_heads=num_heads, qkv_bias=True)
    y = jax.block_until_ready(y)
    y_ref = attention_ref(x, params, num_heads=num_heads, qkv_bias=True)
    assert y.shape == (B, N, C)
    assert jnp.allclose(y, y_ref, **tol), "mismatch vs JAX reference (qkv_bias=True)"

    # qkv_bias=False path (bias input is dropped entirely)
    y2 = attention_pallas(x, params, num_heads=num_heads, qkv_bias=False)
    y2 = jax.block_until_ready(y2)
    y2_ref = attention_ref(x, params, num_heads=num_heads, qkv_bias=False)
    assert jnp.allclose(y2, y2_ref, **tol), "mismatch vs JAX reference (qkv_bias=False)"

    print("KERNEL_OK")
</pallas_src>

<mosaic_0001>
module attributes {stable_mosaic.version = 11 : i64} {
  func.func @_attention_kernel(%arg0: i32, %arg1: memref<2x16x128xf32, #tpu.memory_space<vmem>>, %arg2: memref<128x384xbf16, #tpu.memory_space<vmem>>, %arg3: memref<1x384xf32, #tpu.memory_space<vmem>>, %arg4: memref<128x128xbf16, #tpu.memory_space<vmem>>, %arg5: memref<1x128xf32, #tpu.memory_space<vmem>>, %arg6: memref<2x16x128xf32, #tpu.memory_space<vmem>>) attributes {dimension_semantics = [#tpu.dimension_semantics<parallel>], iteration_bounds = array<i64: 1>, scalar_prefetch = 0 : i64, scratch_operands = 0 : i64, tpu.core_type = #tpu.core_type<tc>, window_params = [{transform_indices = @transform_0, window_bounds = array<i64: 2, 16, 128>}, {pipeline_mode = #tpu.pipeline_mode<synchronous>, transform_indices = @transform_1, window_bounds = array<i64: 128, 384>}, {pipeline_mode = #tpu.pipeline_mode<synchronous>, transform_indices = @transform_2, window_bounds = array<i64: 1, 384>}, {pipeline_mode = #tpu.pipeline_mode<synchronous>, transform_indices = @transform_3, window_bounds = array<i64: 128, 128>}, {pipeline_mode = #tpu.pipeline_mode<synchronous>, transform_indices = @transform_4, window_bounds = array<i64: 1, 128>}, {transform_indices = @transform_5, window_bounds = array<i64: 2, 16, 128>}]} {
    %c0 = arith.constant 0 : index
    %c0_0 = arith.constant 0 : index
    %c0_1 = arith.constant 0 : index
    %0 = vector.load %arg1[%c0, %c0_0, %c0_1] : memref<2x16x128xf32, #tpu.memory_space<vmem>>, vector<2x16x128xf32>
    %1 = vector.shape_cast %0 : vector<2x16x128xf32> to vector<32x128xf32>
    %2 = arith.truncf %1 : vector<32x128xf32> to vector<32x128xbf16>
    %c0_2 = arith.constant 0 : index
    %c0_3 = arith.constant 0 : index
    %3 = vector.load %arg2[%c0_2, %c0_3] : memref<128x384xbf16, #tpu.memory_space<vmem>>, vector<128x384xbf16>
    %cst = arith.constant dense<0.000000e+00> : vector<32x384xf32>
    %4 = tpu.matmul %2, %3, %cst {dimension_numbers = #tpu.dot_dimension_numbers<[1], [0], [0], [1], [0, 0, 1, 1], [], []>} : vector<32x128xbf16>, vector<128x384xbf16>, vector<32x384xf32> -> vector<32x384xf32>
    %c0_4 = arith.constant 0 : index
    %c0_5 = arith.constant 0 : index
    %5 = vector.load %arg3[%c0_4, %c0_5] : memref<1x384xf32, #tpu.memory_space<vmem>>, vector<1x384xf32>
    %6 = vector.broadcast %5 : vector<1x384xf32> to vector<32x384xf32>
    %7 = arith.addf %4, %6 : vector<32x384xf32>
    %8 = vector.extract_strided_slice %7 {offsets = [0, 0], sizes = [32, 128], strides = [1, 1]} : vector<32x384xf32> to vector<32x128xf32>
    %9 = vector.shape_cast %8 : vector<32x128xf32> to vector<2x16x4x32xf32>
    %10 = tpu.transpose %9, [0, 2, 1, 3] : vector<2x16x4x32xf32> -> vector<2x4x16x32xf32>
    %11 = vector.shape_cast %10 : vector<2x4x16x32xf32> to vector<8x16x32xf32>
    %12 = arith.truncf %11 : vector<8x16x32xf32> to vector<8x16x32xbf16>
    %13 = vector.extract_strided_slice %7 {offsets = [0, 128], sizes = [32, 128], strides = [1, 1]} : vector<32x384xf32> to vector<32x128xf32>
    %14 = vector.shape_cast %13 : vector<32x128xf32> to vector<2x16x4x32xf32>
    %15 = tpu.transpose %14, [0, 2, 1, 3] : vector<2x16x4x32xf32> -> vector<2x4x16x32xf32>
    %16 = vector.shape_cast %15 : vector<2x4x16x32xf32> to vector<8x16x32xf32>
    %17 = arith.truncf %16 : vector<8x16x32xf32> to vector<8x16x32xbf16>
    %18 = vector.extract_strided_slice %7 {offsets = [0, 256], sizes = [32, 128], strides = [1, 1]} : vector<32x384xf32> to vector<32x128xf32>
    %19 = vector.shape_cast %18 : vector<32x128xf32> to vector<2x16x4x32xf32>
    %20 = tpu.transpose %19, [0, 2, 1, 3] : vector<2x16x4x32xf32> -> vector<2x4x16x32xf32>
    %21 = vector.shape_cast %20 : vector<2x4x16x32xf32> to vector<8x16x32xf32>
    %22 = arith.truncf %21 : vector<8x16x32xf32> to vector<8x16x32xbf16>
    "tpu.trace_start"() <{level = 10 : i32, message = "gnd,gmd->gnm"}> : () -> ()
    %cst_6 = arith.constant dense<0.000000e+00> : vector<8x16x16xf32>
    %23 = tpu.matmul %12, %17, %cst_6 {dimension_numbers = #tpu.dot_dimension_numbers<[2], [2], [1], [1], [0, 0, 0, 1, 1, 1], [0], [0]>} : vector<8x16x32xbf16>, vector<8x16x32xbf16>, vector<8x16x16xf32> -> vector<8x16x16xf32>
    "tpu.trace_stop"() : () -> ()
    %cst_7 = arith.constant dense<0xFF800000> : vector<8x16xf32>
    %24 = vector.multi_reduction <maximumf>, %23, %cst_7 [2] : vector<8x16x16xf32> to vector<8x16xf32>
    %25 = vector.shape_cast %24 : vector<8x16xf32> to vector<8x16x1xf32>
    %26 = vector.broadcast %25 : vector<8x16x1xf32> to vector<8x16x16xf32>
    %27 = arith.subf %23, %26 : vector<8x16x16xf32>
    %28 = math.exp %27 : vector<8x16x16xf32>
    %cst_8 = arith.constant dense<0.000000e+00> : vector<8x16xf32>
    %29 = vector.multi_reduction <add>, %28, %cst_8 [2] : vector<8x16x16xf32> to vector<8x16xf32>
    %30 = vector.shape_cast %29 : vector<8x16xf32> to vector<8x16x1xf32>
    %31 = tpu.reciprocal %30 {approx = true} : vector<8x16x1xf32> -> vector<8x16x1xf32>
    %32 = vector.broadcast %31 : vector<8x16x1xf32> to vector<8x16x16xf32>
    %33 = arith.mulf %28, %32 : vector<8x16x16xf32>
    %34 = arith.truncf %33 : vector<8x16x16xf32> to vector<8x16x16xbf16>
    "tpu.trace_start"() <{level = 10 : i32, message = "gnm,gmd->gnd"}> : () -> ()
    %cst_9 = arith.constant dense<0.000000e+00> : vector<8x16x32xf32>
    %35 = tpu.matmul %34, %22, %cst_9 {dimension_numbers = #tpu.dot_dimension_numbers<[2], [1], [1], [2], [0, 0, 0, 1, 1, 2], [0], [0]>} : vector<8x16x16xbf16>, vector<8x16x32xbf16>, vector<8x16x32xf32> -> vector<8x16x32xf32>
    "tpu.trace_stop"() : () -> ()
    %36 = vector.shape_cast %35 : vector<8x16x32xf32> to vector<2x4x16x32xf32>
    %37 = tpu.transpose %36, [0, 2, 1, 3] : vector<2x4x16x32xf32> -> vector<2x16x4x32xf32>
    %38 = vector.shape_cast %37 : vector<2x16x4x32xf32> to vector<32x128xf32>
    %39 = arith.truncf %38 : vector<32x128xf32> to vector<32x128xbf16>
    %c0_10 = arith.constant 0 : index
    %c0_11 = arith.constant 0 : index
    %40 = vector.load %arg4[%c0_10, %c0_11] : memref<128x128xbf16, #tpu.memory_space<vmem>>, vector<128x128xbf16>
    %cst_12 = arith.constant dense<0.000000e+00> : vector<32x128xf32>
    %41 = tpu.matmul %39, %40, %cst_12 {dimension_numbers = #tpu.dot_dimension_numbers<[1], [0], [0], [1], [0, 0, 1, 1], [], []>} : vector<32x128xbf16>, vector<128x128xbf16>, vector<32x128xf32> -> vector<32x128xf32>
    %c0_13 = arith.constant 0 : index
    %c0_14 = arith.constant 0 : index
    %42 = vector.load %arg5[%c0_13, %c0_14] : memref<1x128xf32, #tpu.memory_space<vmem>>, vector<1x128xf32>
    %43 = vector.broadcast %42 : vector<1x128xf32> to vector<32x128xf32>
    %44 = arith.addf %41, %43 : vector<32x128xf32>
    %45 = vector.shape_cast %44 : vector<32x128xf32> to vector<2x16x128xf32>
    %c0_15 = arith.constant 0 : index
    %c0_16 = arith.constant 0 : index
    %c0_17 = arith.constant 0 : index
    %46 = vector.load %arg6[%c0_15, %c0_16, %c0_17] : memref<2x16x128xf32, #tpu.memory_space<vmem>>, vector<2x16x128xf32>
    tpu.vector_store %arg6[%c0_15, %c0_16, %c0_17], %45 {strides = array<i32>} : memref<2x16x128xf32, #tpu.memory_space<vmem>>, vector<2x16x128xf32>,
    return
  }
  func.func @transform_0(%arg0: i32) -> (i32, i32, i32) {
    %c0_i32 = arith.constant 0 : i32
    %c0_i32_0 = arith.constant 0 : i32
    %c0_i32_1 = arith.constant 0 : i32
    return %arg0, %c0_i32, %c0_i32_0 : i32, i32, i32
  }
  func.func @transform_1(%arg0: i32) -> (i32, i32) {
    %c0_i32 = arith.constant 0 : i32
    %c0_i32_0 = arith.constant 0 : i32
    %c0_i32_1 = arith.constant 0 : i32
    return %c0_i32, %c0_i32_0 : i32, i32
  }
  func.func @transform_2(%arg0: i32) -> (i32, i32) {
    %c0_i32 = arith.constant 0 : i32
    %c0_i32_0 = arith.constant 0 : i32
    %c0_i32_1 = arith.constant 0 : i32
    return %c0_i32, %c0_i32_0 : i32, i32
  }
  func.func @transform_3(%arg0: i32) -> (i32, i32) {
    %c0_i32 = arith.constant 0 : i32
    %c0_i32_0 = arith.constant 0 : i32
    %c0_i32_1 = arith.constant 0 : i32
    return %c0_i32, %c0_i32_0 : i32, i32
  }
  func.func @transform_4(%arg0: i32) -> (i32, i32) {
    %c0_i32 = arith.constant 0 : i32
    %c0_i32_0 = arith.constant 0 : i32
    %c0_i32_1 = arith.constant 0 : i32
    return %c0_i32, %c0_i32_0 : i32, i32
  }
  func.func @transform_5(%arg0: i32) -> (i32, i32, i32) {
    %c0_i32 = arith.constant 0 : i32
    %c0_i32_0 = arith.constant 0 : i32
    %c0_i32_1 = arith.constant 0 : i32
    return %arg0, %c0_i32, %c0_i32_0 : i32, i32, i32
  }
}

</mosaic_0001>

<bundles_post_ra>
// kernel: tpu_custom_call.1
= control target key start
LH: loop header
LB: loop body
LE: loop exit
PB: predicated region body
PF: predicated region fallthrough
CT: control target
= control target key end

     0   :  { %10 = vsyncpa [#allocation3], 0  ;;  %s5352_s0 = inlined_call_operand.hbm [shape: f32[2,16,128], index: 0, kind: input, shape index: {}]   ;;  %s5353_s1 = inlined_call_operand.hbm [shape: bf16[128,384], index: 1, kind: input, shape index: {}]   ;;  %s5354_s2 = inlined_call_operand.vmem [shape: f32[1,384], index: 2, kind: input, shape index: {}]   ;;  %s5355_s3 = inlined_call_operand.hbm [shape: bf16[128,128], index: 3, kind: input, shape index: {}]   ;;  %s5356_s4 = inlined_call_operand.vmem [shape: f32[1,128], index: 4, kind: input, shape index: {}]   ;;  %s5357_s5 = inlined_call_operand.hbm [shape: f32[2,16,128], index: 5, kind: output, shape index: {}]  }
   0x1   :  { %11 = vsyncpa [#allocation6], 0 }
   0x2   :  { %12 = vsyncpa [#allocation4], 0  ;;  %s4302_s18 = smov [#allocation5]   ;;  %s4208_s22 = scalar_lea.hbm %s5353_s1, 3072 }
   0x3   :  { %s30_s19 = sshll.u32 %s4302_s18, 4  ;;  %p4209_p0 = scmp.ne.s32.totalorder %s5353_s1, %s4208_s22  ;;  %s31_s19 = int_to_ptr.vmem [resolvable:$true] %s30_s19 }
   0x4   :  { %p4212_p1 = scmp.lt.u32.totalorder %s4208_s22, %s5353_s1 }
   0x6   :  { %p4214_p2 = pnand %p4212_p1, %p4209_p0 }
   0x8   :  { %4217 = shalt.err (!%p4214_p2)
}
   0x9   :  { %s4218_s27 = scalar_lea.vmem %s31_s19, 3072  ;;  %p4223_p4 = scmp.lt.s32.totalorder %s31_s19, %s31_s19 }
   0xa   :  { %p4219_p3 = scmp.ne.s32.totalorder %s31_s19, %s4218_s27  ;;  %p4224_p5 = scmp.lt.s32.totalorder %s4218_s27, %s4218_s27 }
   0xc   :  { %p4225_p6 = por %p4224_p5, %p4223_p4 }
   0xe   :  { %p4226_p7 = pnand %p4225_p6, %p4219_p3 }
  0x10   :  { %4229 = shalt.err (!%p4226_p7)
}
  0x11   :  { %s4303_s28 = smov 192   ;;  %s4304_s29 = smov 12  }
  0x12   :  { %36 = dma.hbm_to_vmem [thread:$0]  %s5353_s1, 3072, %s31_s19, [#allocation6], %s4303_s28, %s4303_s28, %s4304_s29  }
  0x13   :  { %s4305_s7 = smov [#allocation2]   ;;  %s4230_s11 = scalar_lea.hbm %s5352_s0, 512 }
  0x14   :  { %s18_s8 = sshll.u32 %s4305_s7, 4  ;;  %p4231_p8 = scmp.ne.s32.totalorder %s5352_s0, %s4230_s11  ;;  %s19_s8 = int_to_ptr.vmem [resolvable:$true] %s18_s8 }
  0x15   :  { %p4234_p9 = scmp.lt.u32.totalorder %s4230_s11, %s5352_s0 }
  0x17   :  { %p4236_p10 = pnand %p4234_p9, %p4231_p8 }
  0x19   :  { %4239 = shalt.err (!%p4236_p10)
}
  0x1a   :  { %s4240_s16 = scalar_lea.vmem %s19_s8, 512  ;;  %p4245_p12 = scmp.lt.s32.totalorder %s19_s8, %s19_s8 }
  0x1b   :  { %p4241_p11 = scmp.ne.s32.totalorder %s19_s8, %s4240_s16  ;;  %p4246_p13 = scmp.lt.s32.totalorder %s4240_s16, %s4240_s16 }
  0x1d   :  { %p4247_p0 = por %p4246_p13, %p4245_p12 }
  0x1f   :  { %p4248_p1 = pnand %p4247_p0, %p4241_p11 }
  0x21   :  { %4251 = shalt.err (!%p4248_p1)
}
  0x22   :  { %s4306_s1 = smov 128   ;;  %s4307_s17 = smov 8  }
  0x23   :  { %24 = dma.hbm_to_vmem [thread:$0]  %s5352_s0, 512, %s19_s8, [#allocation3], %s4306_s1, %s4306_s1, %s4307_s17  }
  0x24   :  { %s4308_s20 = smov [#allocation7]   ;;  %s4252_s24 = scalar_lea.hbm %s5355_s3, 1024 }
  0x25   :  { %s44_s21 = sshll.u32 %s4308_s20, 4  ;;  %p4253_p2 = scmp.ne.s32.totalorder %s5355_s3, %s4252_s24  ;;  %s45_s21 = int_to_ptr.vmem [resolvable:$true] %s44_s21 }
  0x26   :  { %p4256_p3 = scmp.lt.u32.totalorder %s4252_s24, %s5355_s3 }
  0x28   :  { %p4258_p4 = pnand %p4256_p3, %p4253_p2 }
  0x2a   :  { %4261 = shalt.err (!%p4258_p4)
}
  0x2b   :  { %s4262_s29 = scalar_lea.vmem %s45_s21, 1024  ;;  %p4267_p6 = scmp.lt.s32.totalorder %s45_s21, %s45_s21 }
  0x2c   :  { %p4263_p5 = scmp.ne.s32.totalorder %s45_s21, %s4262_s29  ;;  %p4268_p7 = scmp.lt.s32.totalorder %s4262_s29, %s4262_s29 }
  0x2e   :  { %p4269_p8 = por %p4268_p7, %p4267_p6 }
  0x30   :  { %p4270_p9 = pnand %p4269_p8, %p4263_p5 }
  0x32   :  { %4273 = shalt.err (!%p4270_p9)
}
  0x33   :  { %s4309_s0 = smov 64   ;;  %s4310_s30 = smov 4  }
  0x34   :  { %50 = dma.hbm_to_vmem [thread:$0]  %s5355_s3, 1024, %s45_s21, [#allocation6], %s4309_s0, %s4309_s0, %s4310_s30  }
  0x35   :  { %4296 = dma.done.wait [#allocation3], 512  }
  0x36   :  { %4297 = vsyncadd [#allocation3], 4294966784 }
  0x37   :  { %4298 = dma.done.wait [#allocation6], 4096  }
  0x38   :  { %4299 = vsyncadd [#allocation6], 4294963200  ;;  %v4311_v0 = vmov 0   ;;  %v4104_v1 = vld [vmem:[#allocation5 + $0x4] ss:$12 sps:$4 sm:$0xff]   ;;  %v64_v11 = vld [vmem:[#allocation2 + $0x8] sm:$0xff]  ;;  %v103_v31 = vlaneseq }
  0x39   :  { %278 = vmatprep.mubr.bf16.mxu0 %v4311_v0  ;;  %v4106_v2 = vld [vmem:[#allocation5] ss:$12 sps:$4 sm:$0xff]   ;;  %246 = vmatprep.subr.bf16.mxu0 %v4104_v1  ;;  %v4107_v3 = vld [vmem:[#allocation5 + $0x1c] ss:$12 sps:$4 sm:$0xff]   ;;  %v4109_v4 = vld [vmem:[#allocation5 + $0x18] ss:$12 sps:$4 sm:$0xff]  }
  0x3a   :  { %247 = vmatpush1.bf16.msra.mxu0 %v4106_v2  ;;  %v4110_v5 = vld [vmem:[#allocation5 + $0x34] ss:$12 sps:$4 sm:$0xff]   ;;  %v4112_v6 = vld [vmem:[#allocation5 + $0x30] ss:$12 sps:$4 sm:$0xff]   ;;  %v4113_v7 = vld [vmem:[#allocation5 + $0x4c] ss:$12 sps:$4 sm:$0xff]  }
  0x3b   :  { %248 = vmatprep.subr.bf16.mxu0 %v4107_v3  ;;  %v63_v8 = vld [vmem:[#allocation2] sm:$0xff]  ;;  %v4115_v9 = vld [vmem:[#allocation5 + $0x48] ss:$12 sps:$4 sm:$0xff]   ;;  %v4131_v20 = vld [vmem:[#allocation5 + $0x50] ss:$12 sps:$4 sm:$0xff]   ;;  %v4390_v32 = vshrl.u32 %v103_v31, 7 }
  0x3c   :  { %v4116_v10 = vld [vmem:[#allocation5 + $0x64] ss:$12 sps:$4 sm:$0xff]   ;;  %v67_v12 = vpack.c.bf16 %v64_v11, %v63_v8  ;;  %v4128_v13 = vld [vmem:[#allocation5 + $0x8] ss:$12 sps:$4 sm:$0xff]   ;;  %v4129_v14 = vld [vmem:[#allocation5 + $0x20] ss:$12 sps:$4 sm:$0xff]  }
  0x3d   :  { %v4118_v15 = vld [vmem:[#allocation5 + $0x60] ss:$12 sps:$4 sm:$0xff]   ;;  %3921 = vmatprep.subr.bf16.mxu1 %v4128_v13  ;;  %v4119_v16 = vld [vmem:[#allocation5 + $0x7c] ss:$12 sps:$4 sm:$0xff]   ;;  %v4130_v17 = vld [vmem:[#allocation5 + $0x38] ss:$12 sps:$4 sm:$0xff]  }
  0x3e   :  { %249 = vmatpush1.bf16.msra.mxu0 %v4109_v4  ;;  %3937 = vmatprep.mubr.bf16.mxu1 %v67_v12  ;;  %v4121_v18 = vld [vmem:[#allocation5 + $0x78] ss:$12 sps:$4 sm:$0xff]   ;;  %v4122_v19 = vld [vmem:[#allocation5 + $0x94] ss:$12 sps:$4 sm:$0xff]   ;;  %v4124_v21 = vld [vmem:[#allocation5 + $0x90] ss:$12 sps:$4 sm:$0xff]  }
  0x3f   :  { %250 = vmatprep.subr.bf16.mxu0 %v4110_v5  ;;  %3922 = vmatpush3.bf16.msra.mxu1 %v4128_v13  ;;  %v4125_v22 = vld [vmem:[#allocation5 + $0xac] ss:$12 sps:$4 sm:$0xff]   ;;  %v4132_v23 = vld [vmem:[#allocation5 + $0x68] ss:$12 sps:$4 sm:$0xff]   ;;  %v4135_v29 = vld [vmem:[#allocation5 + $0xb0] ss:$12 sps:$4 sm:$0xff]  }
  0x40   :  { %3923 = vmatprep.subr.bf16.mxu1 %v4129_v14  ;;  %v4127_v24 = vld [vmem:[#allocation5 + $0xa8] ss:$12 sps:$4 sm:$0xff]   ;;  %v4133_v25 = vld [vmem:[#allocation5 + $0x80] ss:$12 sps:$4 sm:$0xff]   ;;  %v4134_v26 = vld [vmem:[#allocation5 + $0x98] ss:$12 sps:$4 sm:$0xff]  }
  0x41   :  { %v65_v27 = vld [vmem:[#allocation2 + $0x10] sm:$0xff]  ;;  %v66_v28 = vld [vmem:[#allocation2 + $0x18] sm:$0xff]  ;;  %v105_v33 = vsub.s32 0, %v4390_v32  ;;  %v101_v34 = vld [vmem:[%s5354_s2] sm:$0x7]  ;;  %v109_v35 = vsub.s32 1, %v4390_v32 }
  0x42   :  { %251 = vmatpush1.bf16.msra.mxu0 %v4112_v6  ;;  %v68_v30 = vpack.c.bf16 %v66_v28, %v65_v27  ;;  %s4312_s9 = smov 96   ;;  %s4313_s2 = smov 32   ;;  %v4314_v54 = vmov 0.0   ;;  %vm4315_vm0 = vmmov 0   ;;  %v113_v55 = vsub.s32 2, %v4390_v32 }
  0x43   :  { %252 = vmatprep.subr.bf16.mxu0 %v4113_v7  ;;  %3924 = vmatpush3.bf16.msra.mxu1 %v4129_v14  ;;  %v106_v36 = vrot.slane %v101_v34, %v105_v33  ;;  %v110_v37 = vrot.slane %v101_v34, %v109_v35  ;;  %v4316_v1 = vmov 1983009808   ;;  %v4317_v5 = vmov 1934713408   ;;  %s4318_s12 = smov [#allocation8]  }
  0x44   :  { %3925 = vmatprep.subr.bf16.mxu1 %v4130_v17  ;;  %v114_v58 = vrot.slane %v101_v34, %v113_v55  ;;  %v391_v2 = vunpack.c.l.s4 %v4316_v1  ;;  %v423_v6 = vunpack.c.l.s4 %v4317_v5  ;;  %vm2124_vm1 = vcmask 261120   ;;  %s3775_s13 = sshll.u32 %s4318_s12, 4  ;;  %s3776_s13 = int_to_ptr.vmem [resolvable:$true] %s3775_s13 }
  0x45   :  { %vm2501_vm2 = vcmask 130048   ;;  %vm3634_vm3 = vcmask 523264   ;;  %vm3639_vm4 = vcmask 785408   ;;  %s4274_s14 = scalar_lea.vmem %s3776_s13, 512  ;;  %p4279_p11 = scmp.lt.s32.totalorder %s3776_s13, %s3776_s13 }
  0x46   :  { %253 = vmatpush1.bf16.msra.mxu0 %v4115_v9  ;;  %v392_v7 = vunpack.c.0.s8 %v391_v2  ;;  %p4275_p10 = scmp.ne.s32.totalorder %s3776_s13, %s4274_s14  ;;  %p4280_p12 = scmp.lt.s32.totalorder %s4274_s14, %s4274_s14 }
  0x47   :  { %254 = vmatprep.subr.bf16.mxu0 %v4116_v10  ;;  %3926 = vmatpush3.bf16.msra.mxu1 %v4130_v17  ;;  %v424_v10 = vunpack.c.0.s8 %v423_v6 }
  0x48   :  { %3927 = vmatprep.subr.bf16.mxu1 %v4131_v20  ;;  %v4495_v11 = vsub.s32 %v392_v7, %v4390_v32  ;;  %p4281_p13 = por %p4280_p12, %p4279_p11 }
  0x4a   :  { %255 = vmatpush1.bf16.msra.mxu0 %v4118_v15  ;;  %p4282_p0 = pnand %p4281_p13, %p4275_p10 }
  0x4b   :  { %256 = vmatprep.subr.bf16.mxu0 %v4119_v16  ;;  %3928 = vmatpush3.bf16.msra.mxu1 %v4131_v20 }
  0x4c   :  { %3929 = vmatprep.subr.bf16.mxu1 %v4132_v23 }
  0x4e   :  { %257 = vmatpush1.bf16.msra.mxu0 %v4121_v18  ;;  %v4500_v18 = vsub.s32 %v424_v10, %v4390_v32 }
  0x4f   :  { %258 = vmatprep.subr.bf16.mxu0 %v4122_v19  ;;  %3930 = vmatpush3.bf16.msra.mxu1 %v4132_v23 }
  0x50   :  { %3931 = vmatprep.subr.bf16.mxu1 %v4133_v25 }
  0x52   :  { %259 = vmatpush1.bf16.msra.mxu0 %v4124_v21 }
  0x53   :  { %260 = vmatprep.subr.bf16.mxu0 %v4125_v22  ;;  %3932 = vmatpush3.bf16.msra.mxu1 %v4133_v25 }
  0x54   :  { %3933 = vmatprep.subr.bf16.mxu1 %v4134_v26 }
  0x56   :  { %261 = vmatpush1.bf16.msra.mxu0 %v4127_v24 }
  0x57   :  { %3934 = vmatpush3.bf16.msra.mxu1 %v4134_v26  ;;  %3941 = vmatprep.subr.bf16.mxu0 %v4314_v54 }
  0x58   :  { %3935 = vmatprep.subr.bf16.mxu1 %v4135_v29 }
  0x59   :  { %279 = vmatmul.mubr.bf16.vlgmr.msra.gmra.mrb[0].mxu0 %v67_v12 }
  0x5a   :  { %288 = vmatprep.mubr.bf16.mxu0 %v4311_v0 }
  0x5b   :  { %3936 = vmatpush3.bf16.msra.mxu1 %v4135_v29 }
  0x5c   :  { %3953 = vmatprep.subr.bf16.mxu1 %v4314_v54 }
  0x5e   :  { %3938 = vmatmul.mubr.bf16.vlgmr.msra.gmra.mrb[0].mxu1 %v68_v30 }
  0x5f   :  { %3955 = vmatprep.mubr.msk.bf16.mxu1 %vm4315_vm0, %v4314_v54 }
  0x61   :  { %289 = vmatmul.mubr.bf16.gmra.mrb[4].mxu0 %v68_v30 }
  0x62   :  { %3943 = vmatprep.mubr.msk.bf16.mxu0 %vm4315_vm0, %v4314_v54 }
 0x12c   :  { %v280_v38 = vpop.f32.mrb[0].mxu0 }
 0x12d   :  { %v4397_v39 = vadd.f32 %v280_v38, %v106_v36  ;;  %v282_v40 = vpop.f32.mrb[1].mxu0 }
 0x12e   :  { %v4399_v41 = vadd.f32 %v282_v40, %v110_v37  ;;  %v284_v42 = vpop.f32.mrb[2].mxu0 }
 0x12f   :  { %v286_v43 = vpop.f32.mrb[3].mxu0  ;;  %352 = vrot.lane.b32.xlu0 %v4397_v39, %s4312_s9  ;;  %v4405_v44 = vadd.f32 %v284_v42, %v106_v36 }
 0x130   :  { %956 = vrot.lane.b32.xlu1 %v4399_v41, %s4309_s0  ;;  %v4411_v47 = vadd.f32 %v286_v43, %v110_v37 }
 0x131   :  { %v3939_v56 = vpop.f32.mrb[0].mxu1 }
 0x132   :  { %v333_v57 = vpop.f32.mrb[1].mxu1  ;;  %v4484_v0 = vadd.f32 %v3939_v56, %v114_v58 }
 0x133   :  { %944 = vrot.lane.b32.xlu0 %v4399_v41, %s4312_s9  ;;  %v3940_v59 = vpop.f32.mrb[2].mxu1  ;;  %v4468_v61 = vadd.f32 %v333_v57, %v114_v58 }
 0x134   :  { %354 = vrot.lane.b32.xlu1 %v4405_v44, %s4312_s9  ;;  %v290_v45 = vpop.f32.mrb[4].mxu0  ;;  %v336_v60 = vpop.f32.mrb[3].mxu1  ;;  %v4470_v62 = vadd.f32 %v3940_v59, %v114_v58 }
 0x135   :  { %v292_v46 = vpop.f32.mrb[5].mxu0  ;;  %v4425_v50 = vadd.f32 %v290_v45, %v106_v36  ;;  %v4472_v63 = vadd.f32 %v336_v60, %v114_v58 }
 0x136   :  { %v294_v48 = vpop.f32.mrb[6].mxu0  ;;  %v4437_v52 = vadd.f32 %v292_v46, %v110_v37 }
 0x137   :  { %968 = vrot.lane.b32.xlu0 %v4399_v41, %s4313_s2  ;;  %v296_v49 = vpop.f32.mrb[7].mxu0  ;;  %v4431_v51 = vadd.f32 %v294_v48, %v106_v36 }
 0x138   :  { %958 = vrot.lane.b32.xlu1 %v4411_v47, %s4309_s0  ;;  %v4439_v53 = vadd.f32 %v296_v49, %v110_v37 }
 0x13b   :  { %946 = vrot.lane.b32.xlu0 %v4411_v47, %s4312_s9 }
 0x13c   :  { %970 = vrot.lane.b32.xlu1 %v4411_v47, %s4313_s2 }
 0x13f   :  { %364 = vrot.lane.b32.xlu0 %v4397_v39, %s4309_s0 }
 0x140   :  { %366 = vrot.lane.b32.xlu1 %v4405_v44, %s4309_s0 }
 0x143   :  { %376 = vrot.lane.b32.xlu0 %v4397_v39, %s4313_s2 }
 0x144   :  { %378 = vrot.lane.b32.xlu1 %v4405_v44, %s4313_s2 }
 0x147   :  { %356 = vrot.lane.b32.xlu0 %v4425_v50, %s4312_s9 }
 0x148   :  { %358 = vrot.lane.b32.xlu1 %v4431_v51, %s4312_s9 }
 0x14b   :  { %948 = vrot.lane.b32.xlu0 %v4437_v52, %s4312_s9 }
 0x14c   :  { %950 = vrot.lane.b32.xlu1 %v4439_v53, %s4312_s9 }
 0x14f   :  { %960 = vrot.lane.b32.xlu0 %v4437_v52, %s4309_s0 }
 0x150   :  { %962 = vrot.lane.b32.xlu1 %v4439_v53, %s4309_s0 }
 0x153   :  { %972 = vrot.lane.b32.xlu0 %v4437_v52, %s4313_s2 }
 0x154   :  { %974 = vrot.lane.b32.xlu1 %v4439_v53, %s4313_s2 }
 0x157   :  { %368 = vrot.lane.b32.xlu0 %v4425_v50, %s4309_s0 }
 0x158   :  { %370 = vrot.lane.b32.xlu1 %v4431_v51, %s4309_s0 }
 0x15b   :  { %380 = vrot.lane.b32.xlu0 %v4425_v50, %s4313_s2 }
 0x15c   :  { %382 = vrot.lane.b32.xlu1 %v4431_v51, %s4313_s2 }
 0x15f   :  { %1538 = vrot.lane.b32.xlu0 %v4472_v63, %s4312_s9 }
 0x160   :  { %1536 = vrot.lane.b32.xlu1 %v4468_v61, %s4312_s9 }
 0x163   :  { %1560 = vrot.lane.b32.xlu0 %v4468_v61, %s4313_s2 }
 0x164   :  { %1548 = vrot.lane.b32.xlu1 %v4468_v61, %s4309_s0 }
 0x168   :  { %1550 = vrot.lane.b32.xlu1 %v4472_v63, %s4309_s0 }
 0x16c   :  { %1562 = vrot.lane.b32.xlu1 %v4472_v63, %s4313_s2 }
 0x170   :  { %1540 = vrot.lane.b32.xlu1 %v4484_v0, %s4312_s9 }
 0x1a1   :  { %v4490_v3 = vpop.permute.xlu0 %352 }
 0x1a2   :  { %v957_v4 = vpop.permute.xlu1 %956 }
 0x1a3   :  { %v980_v12 = vcombine.low %v4399_v41, %v957_v4  ;;  %v981_v13 = vcombine.high %v4399_v41, %v957_v4 }
 0x1a5   :  { %v945_v8 = vpop.permute.xlu0 %944  ;;  %v988_v19 = vrot.slane %v980_v12, %v4495_v11  ;;  %v995_v20 = vrot.slane %v981_v13, %v4495_v11 }
 0x1a6   :  { %v4492_v9 = vpop.permute.xlu1 %354 }
 0x1a9   :  { %v969_v14 = vpop.permute.xlu0 %968 }
 0x1aa   :  { %v996_v15 = vcombine.low %v945_v8, %v969_v14  ;;  %v997_v16 = vcombine.high %v945_v8, %v969_v14  ;;  %v959_v17 = vpop.permute.xlu1 %958 }
 0x1ab   :  { %v1048_v23 = vcombine.low %v4411_v47, %v959_v17  ;;  %v1049_v24 = vcombine.high %v4411_v47, %v959_v17 }
 0x1ac   :  { %v1004_v21 = vrot.slane %v996_v15, %v4495_v11  ;;  %v1011_v22 = vrot.slane %v997_v16, %v4495_v11 }
 0x1ad   :  { %v947_v25 = vpop.permute.xlu0 %946  ;;  %v1056_v37 = vrot.slane %v1048_v23, %v4495_v11  ;;  %v1063_v38 = vrot.slane %v1049_v24, %v4495_v11 }
 0x1ae   :  { %v1012_v26 = vcombine.low %v988_v19, %v1004_v21  ;;  %v1013_v27 = vcombine.high %v988_v19, %v1004_v21  ;;  %v1028_v28 = vcombine.low %v995_v20, %v1011_v22  ;;  %v1029_v29 = vcombine.high %v995_v20, %v1011_v22  ;;  %v971_v30 = vpop.permute.xlu1 %970 }
 0x1af   :  { %v1064_v31 = vcombine.low %v947_v25, %v971_v30  ;;  %v1065_v32 = vcombine.high %v947_v25, %v971_v30 }
 0x1b0   :  { %v1020_v33 = vrot.slane %v1012_v26, %v4500_v18  ;;  %v1027_v34 = vrot.slane %v1013_v27, %v4500_v18  ;;  %v1036_v35 = vrot.slane %v1028_v28, %v4500_v18  ;;  %v1043_v36 = vrot.slane %v1029_v29, %v4500_v18 }
 0x1b1   :  { %v1072_v40 = vrot.slane %v1064_v31, %v4495_v11  ;;  %v1079_v41 = vrot.slane %v1065_v32, %v4495_v11  ;;  %v365_v42 = vpop.permute.xlu0 %364 }
 0x1b2   :  { %v367_v43 = vpop.permute.xlu1 %366  ;;  %v1252_v49 = vcombine.low %v1020_v33, %v1027_v34  ;;  %v3820_v55 = vcombine.high %v1020_v33, %v1027_v34  ;;  %v1268_v56 = vcombine.low %v1036_v35, %v1043_v36  ;;  %v3821_v57 = vcombine.high %v1036_v35, %v1043_v36 }
 0x1b3   :  { %v1080_v45 = vcombine.low %v1056_v37, %v1072_v40  ;;  %v1081_v46 = vcombine.high %v1056_v37, %v1072_v40  ;;  %v1096_v47 = vcombine.low %v1063_v38, %v1079_v41  ;;  %v1097_v48 = vcombine.high %v1063_v38, %v1079_v41 }
 0x1b4   :  { %v388_v4 = vcombine.low %v4397_v39, %v365_v42  ;;  %v389_v5 = vcombine.high %v4397_v39, %v365_v42  ;;  %v456_v6 = vcombine.low %v4405_v44, %v367_v43  ;;  %v457_v7 = vcombine.high %v4405_v44, %v367_v43 }
 0x1b5   :  { %v1088_v58 = vrot.slane %v1080_v45, %v4500_v18  ;;  %v1095_v59 = vrot.slane %v1081_v46, %v4500_v18  ;;  %v1104_v60 = vrot.slane %v1096_v47, %v4500_v18  ;;  %v1111_v1 = vrot.slane %v1097_v48, %v4500_v18  ;;  %v377_v2 = vpop.permute.xlu0 %376 }
 0x1b6   :  { %v379_v8 = vpop.permute.xlu1 %378  ;;  %v4525_v15 = vrot.slane %v1252_v49, %v4495_v11  ;;  %v4528_v16 = vrot.slane %v3820_v55, %v4495_v11  ;;  %v4531_v17 = vrot.slane %v1268_v56, %v4495_v11  ;;  %v4534_v39 = vrot.slane %v3821_v57, %v4495_v11 }
 0x1b7   :  { %v1320_v10 = vcombine.low %v1088_v58, %v1095_v59  ;;  %v3822_v12 = vcombine.high %v1088_v58, %v1095_v59  ;;  %v1336_v13 = vcombine.low %v1104_v60, %v1111_v1  ;;  %v3823_v14 = vcombine.high %v1104_v60, %v1111_v1 }
 0x1b8   :  { %v404_v23 = vcombine.low %v4490_v3, %v377_v2  ;;  %v405_v24 = vcombine.high %v4490_v3, %v377_v2  ;;  %v472_v25 = vcombine.low %v4492_v9, %v379_v8  ;;  %v473_v26 = vcombine.high %v4492_v9, %v379_v8 }
 0x1b9   :  { %v4537_v19 = vrot.slane %v1320_v10, %v4495_v11  ;;  %v4540_v44 = vrot.slane %v3822_v12, %v4495_v11  ;;  %v4543_v20 = vrot.slane %v1336_v13, %v4495_v11  ;;  %v4546_v21 = vrot.slane %v3823_v14, %v4495_v11  ;;  %v4548_v22 = vpop.permute.xlu0 %356 }
 0x1ba   :  { %v4554_v27 = vpop.permute.xlu1 %358  ;;  %v396_v28 = vrot.slane %v388_v4, %v4495_v11  ;;  %v403_v29 = vrot.slane %v389_v5, %v4495_v11  ;;  %v464_v30 = vrot.slane %v456_v6, %v4495_v11  ;;  %v471_v31 = vrot.slane %v457_v7, %v4495_v11 }
 0x1bb   :  { %v412_v32 = vrot.slane %v404_v23, %v4495_v11  ;;  %v419_v33 = vrot.slane %v405_v24, %v4495_v11  ;;  %v480_v3 = vrot.slane %v472_v25, %v4495_v11  ;;  %v487_v34 = vrot.slane %v473_v26, %v4495_v11 }
 0x1bc   :  { %v1284_v9 = vcombine.low %v4525_v15, %v4528_v16  ;;  %v1300_v35 = vcombine.low %v4531_v17, %v4534_v39  ;;  %v1352_v36 = vcombine.low %v4537_v19, %v4540_v44  ;;  %v1368_v37 = vcombine.low %v4543_v20, %v4546_v21 }
 0x1bd   :  { %v420_v38 = vcombine.low %v396_v28, %v412_v32  ;;  %v421_v40 = vcombine.high %v396_v28, %v412_v32  ;;  %v436_v41 = vcombine.low %v403_v29, %v419_v33  ;;  %v437_v42 = vcombine.high %v403_v29, %v419_v33  ;;  %v4572_v48 = vpop.permute.xlu0 %948 }
 0x1be   :  { %v488_v43 = vcombine.low %v464_v30, %v480_v3  ;;  %v489_v45 = vcombine.high %v464_v30, %v480_v3  ;;  %v504_v46 = vcombine.low %v471_v31, %v487_v34  ;;  %v505_v47 = vcombine.high %v471_v31, %v487_v34  ;;  %v4578_v58 = vpop.permute.xlu1 %950 }
 0x1bf   :  { %v428_v49 = vrot.slane %v420_v38, %v4500_v18  ;;  %v435_v55 = vrot.slane %v421_v40, %v4500_v18  ;;  %v444_v56 = vrot.slane %v436_v41, %v4500_v18  ;;  %v451_v57 = vrot.slane %v437_v42, %v4500_v18 }
 0x1c0   :  { %v496_v59 = vrot.slane %v488_v43, %v4500_v18  ;;  %v503_v60 = vrot.slane %v489_v45, %v4500_v18  ;;  %v512_v1 = vrot.slane %v504_v46, %v4500_v18  ;;  %v519_v2 = vrot.slane %v505_v47, %v4500_v18 }
 0x1c1   :  { %v660_v4 = vcombine.low %v428_v49, %v435_v55  ;;  %v3812_v5 = vcombine.high %v428_v49, %v435_v55  ;;  %v676_v6 = vcombine.low %v444_v56, %v451_v57  ;;  %v3813_v7 = vcombine.high %v444_v56, %v451_v57  ;;  %v961_v31 = vpop.permute.xlu0 %960 }
 0x1c2   :  { %v728_v8 = vcombine.low %v496_v59, %v503_v60  ;;  %v3814_v10 = vcombine.high %v496_v59, %v503_v60  ;;  %v744_v12 = vcombine.low %v512_v1, %v519_v2  ;;  %v3815_v13 = vcombine.high %v512_v1, %v519_v2  ;;  %v963_v3 = vpop.permute.xlu1 %962 }
 0x1c3   :  { %v4585_v14 = vrot.slane %v660_v4, %v4495_v11  ;;  %v4588_v23 = vrot.slane %v3812_v5, %v4495_v11  ;;  %v4591_v24 = vrot.slane %v676_v6, %v4495_v11  ;;  %v4594_v25 = vrot.slane %v3813_v7, %v4495_v11 }
 0x1c4   :  { %v4597_v26 = vrot.slane %v728_v8, %v4495_v11  ;;  %v4600_v28 = vrot.slane %v3814_v10, %v4495_v11  ;;  %v4603_v29 = vrot.slane %v744_v12, %v4495_v11  ;;  %v4606_v30 = vrot.slane %v3815_v13, %v4495_v11 }
 0x1c5   :  { %v692_v32 = vcombine.low %v4585_v14, %v4588_v23  ;;  %v708_v33 = vcombine.low %v4591_v24, %v4594_v25  ;;  %v4613_v34 = vrot.slane %v1284_v9, %v4500_v18  ;;  %v4616_v38 = vrot.slane %v1300_v35, %v4500_v18  ;;  %v973_v60 = vpop.permute.xlu0 %972 }
 0x1c6   :  { %v760_v40 = vcombine.low %v4597_v26, %v4600_v28  ;;  %v776_v41 = vcombine.low %v4603_v29, %v4606_v30  ;;  %v4623_v42 = vrot.slane %v1352_v36, %v4500_v18  ;;  %v4626_v43 = vrot.slane %v1368_v37, %v4500_v18  ;;  %v975_v5 = vpop.permute.xlu1 %974 }
 0x1c7   :  { %v693_v9 = vcombine.high %v4585_v14, %v4588_v23  ;;  %v709_v35 = vcombine.high %v4591_v24, %v4594_v25  ;;  %v761_v45 = vcombine.high %v4597_v26, %v4600_v28  ;;  %v777_v46 = vcombine.high %v4603_v29, %v4606_v30 }
 0x1c8   :  { %v4637_v47 = vrot.slane %v692_v32, %v4500_v18  ;;  %v4640_v36 = vrot.slane %v708_v33, %v4500_v18  ;;  %v1116_v37 = vcombine.low %v4437_v52, %v961_v31  ;;  %v1117_v49 = vcombine.high %v4437_v52, %v961_v31 }
 0x1c9   :  { %v4645_v55 = vrot.slane %v760_v40, %v4500_v18  ;;  %v4648_v56 = vrot.slane %v776_v41, %v4500_v18  ;;  %v1316_v57 = vcombine.low %v4613_v34, %v4616_v38  ;;  %v1384_v59 = vcombine.low %v4623_v42, %v4626_v43  ;;  %v369_v31 = vpop.permute.xlu0 %368 }
 0x1ca   :  { %v1124_v1 = vrot.slane %v1116_v37, %v4495_v11  ;;  %v1184_v2 = vcombine.low %v4439_v53, %v963_v3  ;;  %v1185_v4 = vcombine.high %v4439_v53, %v963_v3  ;;  %v1285_v52 = vcombine.high %v4525_v15, %v4528_v16 }
 0x1cb   :  { %v1131_v6 = vrot.slane %v1117_v49, %v4495_v11  ;;  %v1524_v7 = vpack.c.bf16 %v1384_v59, %v1316_v57  ;;  %v1301_v8 = vcombine.high %v4531_v17, %v4534_v39  ;;  %v1353_v10 = vcombine.high %v4537_v19, %v4540_v44 }
 0x1cc   :  { %v4665_v12 = vrot.slane %v1285_v52, %v4500_v18  ;;  %v1369_v13 = vcombine.high %v4543_v20, %v4546_v21  ;;  %v1132_v53 = vcombine.low %v4572_v48, %v973_v60  ;;  %v1133_v15 = vcombine.high %v4572_v48, %v973_v60 }
 0x1cd   :  { %v2129_v16 = vsel %vm2124_vm1, %v1524_v7, 0  ;;  %v4673_v14 = vrot.slane %v1301_v8, %v4500_v18  ;;  %v4676_v17 = vrot.slane %v1353_v10, %v4500_v18  ;;  %v1200_v39 = vcombine.low %v4578_v58, %v975_v5 }
 0x1ce   :  { %3942 = vmatpush3.bf16.xpose.msra.mxu0 %v2129_v16  ;;  %v4680_v19 = vrot.slane %v1369_v13, %v4500_v18  ;;  %v1140_v44 = vrot.slane %v1132_v53, %v4495_v11  ;;  %v1147_v20 = vrot.slane %v1133_v15, %v4495_v11  ;;  %v1201_v21 = vcombine.high %v4578_v58, %v975_v5 }
 0x1cf   :  { %v1192_v48 = vrot.slane %v1184_v2, %v4495_v11  ;;  %v1199_v23 = vrot.slane %v1185_v4, %v4495_v11  ;;  %v1318_v24 = vcombine.low %v4665_v12, %v4673_v14  ;;  %v1208_v25 = vrot.slane %v1200_v39, %v4495_v11  ;;  %3947 = vmatprep.subr.bf16.mxu0 %v4314_v54 }
 0x1d0   :  { %v1386_v32 = vcombine.low %v4676_v17, %v4680_v19  ;;  %v1148_v33 = vcombine.low %v1124_v1, %v1140_v44  ;;  %v1149_v3 = vcombine.high %v1124_v1, %v1140_v44  ;;  %v1164_v40 = vcombine.low %v1131_v6, %v1147_v20 }
 0x1d1   :  { %v1165_v41 = vcombine.high %v1131_v6, %v1147_v20  ;;  %v1215_v58 = vrot.slane %v1201_v21, %v4495_v11  ;;  %v1216_v37 = vcombine.low %v1192_v48, %v1208_v25  ;;  %v1217_v49 = vcombine.high %v1192_v48, %v1208_v25  ;;  %v371_v6 = vpop.permute.xlu1 %370 }
 0x1d2   :  { %v4695_v57 = vrot.slane %v693_v9, %v4500_v18  ;;  %v1526_v59 = vpack.c.bf16 %v1386_v32, %v1318_v24  ;;  %v4698_v60 = vrot.slane %v1148_v33, %v4500_v18  ;;  %v524_v2 = vcombine.low %v4425_v50, %v369_v31 }
 0x1d3   :  { %v4702_v4 = vrot.slane %v1149_v3, %v4500_v18  ;;  %v4705_v1 = vrot.slane %v1164_v40, %v4500_v18  ;;  %v4708_v52 = vrot.slane %v1165_v41, %v4500_v18  ;;  %v1232_v5 = vcombine.low %v1199_v23, %v1215_v58 }
 0x1d4   :  { %v2223_v9 = vsel %vm2124_vm1, %v1526_v59, 0  ;;  %v4712_v7 = vrot.slane %v1216_v37, %v4500_v18  ;;  %v4715_v8 = vrot.slane %v1217_v49, %v4500_v18  ;;  %v1233_v10 = vcombine.high %v1199_v23, %v1215_v58 }
 0x1d5   :  { %v4718_v13 = vrot.slane %v709_v35, %v4500_v18  ;;  %v724_v53 = vcombine.low %v4637_v47, %v4640_v36  ;;  %v792_v15 = vcombine.low %v4645_v55, %v4648_v56  ;;  %3954 = vmatpush3.bf16.xpose.msra.mxu1 %v2223_v9  ;;  %v4725_v16 = vrot.slane %v1232_v5, %v4500_v18 }
 0x1d6   :  { %v4731_v39 = vrot.slane %v761_v45, %v4500_v18  ;;  %v4737_v35 = vrot.slane %v777_v46, %v4500_v18  ;;  %v4740_v44 = vrot.slane %v1233_v10, %v4500_v18  ;;  %v525_v20 = vcombine.high %v4425_v50, %v369_v31  ;;  %3965 = vmatprep.subr.bf16.mxu1 %v4314_v54  ;;  %v381_v46 = vpop.permute.xlu0 %380  ;;  %v383_v31 = vpop.permute.xlu1 %382 }
 0x1d7   :  { %v1388_v21 = vcombine.low %v4698_v60, %v4702_v4  ;;  %v3824_v26 = vcombine.high %v4698_v60, %v4702_v4  ;;  %v1404_v28 = vcombine.low %v4705_v1, %v4708_v52  ;;  %v3825_v29 = vcombine.high %v4705_v1, %v4708_v52 }
 0x1d8   :  { %v1456_v30 = vcombine.low %v4712_v7, %v4715_v8  ;;  %v3826_v50 = vcombine.high %v4712_v7, %v4715_v8  ;;  %v532_v45 = vrot.slane %v524_v2, %v4495_v11  ;;  %v1472_v48 = vcombine.low %v4725_v16, %v4740_v44 }
 0x1d9   :  { %v592_v23 = vcombine.low %v4431_v51, %v371_v6  ;;  %v932_v24 = vpack.c.bf16 %v792_v15, %v724_v53  ;;  %v726_v25 = vcombine.low %v4695_v57, %v4718_v13  ;;  %v3827_v32 = vcombine.high %v4725_v16, %v4740_v44 }
 0x1da   :  { %v539_v33 = vrot.slane %v525_v20, %v4495_v11  ;;  %v593_v3 = vcombine.high %v4431_v51, %v371_v6  ;;  %v794_v40 = vcombine.low %v4731_v39, %v4737_v35  ;;  %v1317_v58 = vcombine.high %v4613_v34, %v4616_v38 }
 0x1db   :  { %v600_v41 = vrot.slane %v592_v23, %v4495_v11  ;;  %3944 = vmatmul.mubr.msk.bf16.vlgmr.msra.gmra.mrb[8].mxu0 %vm2124_vm1, %v932_v24  ;;  %v1385_v37 = vcombine.high %v4623_v42, %v4626_v43  ;;  %v540_v49 = vcombine.low %v4548_v22, %v381_v46  ;;  %v541_v2 = vcombine.high %v4548_v22, %v381_v46 }
 0x1dc   :  { %v934_v59 = vpack.c.bf16 %v794_v40, %v726_v25  ;;  %v608_v51 = vcombine.low %v4554_v27, %v383_v31  ;;  %v609_v5 = vcombine.high %v4554_v27, %v383_v31  ;;  %3949 = vmatprep.mubr.msk.bf16.mxu0 %vm4315_vm0, %v4314_v54  ;;  %v725_v34 = vcombine.high %v4637_v47, %v4640_v36 }
 0x1dd   :  { %v1525_v6 = vpack.c.bf16 %v1385_v37, %v1317_v58  ;;  %v548_v9 = vrot.slane %v540_v49, %v4495_v11  ;;  %v793_v38 = vcombine.high %v4645_v55, %v4648_v56  ;;  %v607_v42 = vrot.slane %v593_v3, %v4495_v11 }
 0x1de   :  { %3956 = vmatmul.mubr.msk.bf16.vlgmr.msra.gmra.mrb[4].mxu1 %vm2124_vm1, %v934_v59  ;;  %v555_v22 = vrot.slane %v541_v2, %v4495_v11  ;;  %v616_v27 = vrot.slane %v608_v51, %v4495_v11  ;;  %v623_v43 = vrot.slane %v609_v5, %v4495_v11  ;;  %v1463_v60 = vrot.slane %v1456_v30, %v4495_v11 }
 0x1df   :  { %v2176_v10 = vsel %vm2124_vm1, %v1525_v6, 0  ;;  %v556_v53 = vcombine.low %v532_v45, %v548_v9  ;;  %v557_v15 = vcombine.high %v532_v45, %v548_v9  ;;  %v933_v20 = vpack.c.bf16 %v793_v38, %v725_v34  ;;  %3967 = vmatprep.mubr.msk.bf16.mxu1 %vm4315_vm0, %v4314_v54 }
 0x1e0   :  { %3948 = vmatpush3.bf16.xpose.msra.mxu0 %v2176_v10  ;;  %v572_v47 = vcombine.low %v539_v33, %v555_v22  ;;  %v573_v36 = vcombine.high %v539_v33, %v555_v22  ;;  %v624_v55 = vcombine.low %v600_v41, %v616_v27  ;;  %v625_v56 = vcombine.high %v600_v41, %v616_v27 }
 0x1e1   :  { %v564_v46 = vrot.slane %v556_v53, %v4500_v18  ;;  %v571_v23 = vrot.slane %v557_v15, %v4500_v18  ;;  %v640_v24 = vcombine.low %v607_v42, %v623_v43  ;;  %v641_v25 = vcombine.high %v607_v42, %v623_v43  ;;  %3959 = vmatprep.subr.bf16.mxu0 %v4314_v54 }
 0x1e2   :  { %v580_v31 = vrot.slane %v572_v47, %v4500_v18  ;;  %v587_v45 = vrot.slane %v573_v36, %v4500_v18  ;;  %v632_v3 = vrot.slane %v624_v55, %v4500_v18  ;;  %v639_v40 = vrot.slane %v625_v56, %v4500_v18 }
 0x1e3   :  { %v796_v58 = vcombine.low %v564_v46, %v571_v23  ;;  %v3816_v33 = vcombine.high %v564_v46, %v571_v23  ;;  %v648_v41 = vrot.slane %v640_v24, %v4500_v18  ;;  %v655_v37 = vrot.slane %v641_v25, %v4500_v18 }
 0x1e4   :  { %v812_v49 = vcombine.low %v580_v31, %v587_v45  ;;  %v3817_v59 = vcombine.high %v580_v31, %v587_v45  ;;  %v864_v2 = vcombine.low %v632_v3, %v639_v40  ;;  %v3818_v51 = vcombine.high %v632_v3, %v639_v40 }
 0x1e5   :  { %v4803_v5 = vrot.slane %v796_v58, %v4495_v11  ;;  %v4806_v6 = vrot.slane %v3816_v33, %v4495_v11  ;;  %v880_v9 = vcombine.low %v648_v41, %v655_v37  ;;  %v3819_v34 = vcombine.high %v648_v41, %v655_v37 }
 0x1e6   :  { %v4809_v38 = vrot.slane %v812_v49, %v4495_v11  ;;  %v4812_v42 = vrot.slane %v3817_v59, %v4495_v11  ;;  %v4815_v22 = vrot.slane %v864_v2, %v4495_v11  ;;  %v4818_v27 = vrot.slane %v3818_v51, %v4495_v11 }
 0x1e7   :  { %v1395_v43 = vrot.slane %v1388_v21, %v4495_v11  ;;  %v1403_v10 = vrot.slane %v3824_v26, %v4495_v11  ;;  %v4829_v53 = vrot.slane %v880_v9, %v4495_v11  ;;  %v4832_v15 = vrot.slane %v3819_v34, %v4495_v11  ;;  %3950 = vmatmul.mubr.msk.bf16.vlgmr.msra.gmra.mrb[12].mxu0 %vm2124_vm1, %v933_v20 }
 0x1e8   :  { %v1411_v47 = vrot.slane %v1404_v28, %v4495_v11  ;;  %v1419_v21 = vrot.slane %v3825_v29, %v4495_v11  ;;  %v1471_v4 = vrot.slane %v3826_v50, %v4495_v11  ;;  %3961 = vmatprep.mubr.msk.bf16.mxu0 %vm4315_vm0, %v4314_v54  ;;  %v1479_v26 = vrot.slane %v1472_v48, %v4495_v11 }
 0x1e9   :  { %v1487_v1 = vrot.slane %v3827_v32, %v4495_v11  ;;  %v828_v52 = vcombine.low %v4803_v5, %v4806_v6  ;;  %v844_v7 = vcombine.low %v4809_v38, %v4812_v42  ;;  %v896_v8 = vcombine.low %v4815_v22, %v4818_v27 }
 0x1ea   :  { %v912_v28 = vcombine.low %v4829_v53, %v4832_v15  ;;  %v1319_v29 = vcombine.high %v4665_v12, %v4673_v14  ;;  %v1387_v30 = vcombine.high %v4676_v17, %v4680_v19  ;;  %v1420_v16 = vcombine.low %v1395_v43, %v1403_v10 }
 0x1eb   :  { %v1436_v44 = vcombine.low %v1411_v47, %v1419_v21  ;;  %v1488_v50 = vcombine.low %v1463_v60, %v1471_v4  ;;  %v836_v48 = vrot.slane %v828_v52, %v4500_v18  ;;  %v852_v32 = vrot.slane %v844_v7, %v4500_v18 }
 0x1ec   :  { %v1527_v20 = vpack.c.bf16 %v1387_v30, %v1319_v29  ;;  %v1504_v36 = vcombine.low %v1479_v26, %v1487_v1  ;;  %v904_v55 = vrot.slane %v896_v8, %v4500_v18  ;;  %v1428_v56 = vrot.slane %v1420_v16, %v4500_v18  ;;  %v1537_v16 = vpop.permute.xlu1 %1536 }
 0x1ed   :  { %v1444_v46 = vrot.slane %v1436_v44, %v4500_v18  ;;  %v1496_v12 = vrot.slane %v1488_v50, %v4500_v18  ;;  %v920_v14 = vrot.slane %v912_v28, %v4500_v18  ;;  %v727_v19 = vcombine.high %v4695_v57, %v4718_v13  ;;  %v1539_v44 = vpop.permute.xlu0 %1538 }
 0x1ee   :  { %v2270_v17 = vsel %vm2124_vm1, %v1527_v20, 0  ;;  %v1512_v23 = vrot.slane %v1504_v36, %v4500_v18  ;;  %v795_v24 = vcombine.high %v4731_v39, %v4737_v35  ;;  %v1421_v45 = vcombine.high %v1395_v43, %v1403_v10 }
 0x1ef   :  { %3960 = vmatpush3.bf16.xpose.msra.mxu0 %v2270_v17  ;;  %v1452_v25 = vcombine.low %v1428_v56, %v1444_v46  ;;  %v1453_v31 = vcombine.high %v1428_v56, %v1444_v46  ;;  %v1437_v58 = vcombine.high %v1411_v47, %v1419_v21  ;;  %v1489_v33 = vcombine.high %v1463_v60, %v1471_v4 }
 0x1f0   :  { %3971 = vmatprep.subr.bf16.mxu0 %v4314_v54  ;;  %v1520_v3 = vcombine.low %v1496_v12, %v1512_v23  ;;  %v1521_v40 = vcombine.high %v1496_v12, %v1512_v23  ;;  %v829_v41 = vcombine.high %v4803_v5, %v4806_v6  ;;  %v1435_v57 = vrot.slane %v1421_v45, %v4500_v18  ;;  %v1549_v20 = vpop.permute.xlu1 %1548 }
 0x1f1   :  { %v1505_v13 = vcombine.high %v1479_v26, %v1487_v1  ;;  %v1451_v59 = vrot.slane %v1437_v58, %v4500_v18  ;;  %v1503_v39 = vrot.slane %v1489_v33, %v4500_v18  ;;  %v845_v35 = vcombine.high %v4809_v38, %v4812_v42  ;;  %v1561_v36 = vpop.permute.xlu0 %1560 }
 0x1f2   :  { %v1528_v37 = vpack.c.bf16 %v1520_v3, %v1452_v25  ;;  %v1529_v49 = vpack.c.bf16 %v1521_v40, %v1453_v31  ;;  %v860_v2 = vcombine.low %v836_v48, %v852_v32  ;;  %v928_v51 = vcombine.low %v904_v55, %v920_v14 }
 0x1f3   :  { %v1519_v9 = vrot.slane %v1505_v13, %v4500_v18  ;;  %v935_v34 = vpack.c.bf16 %v795_v24, %v727_v19  ;;  %v1454_v6 = vcombine.low %v1435_v57, %v1451_v59  ;;  %v897_v10 = vcombine.high %v4815_v22, %v4818_v27 }
 0x1f4   :  { %v2317_v43 = vsel %vm2124_vm1, %v1528_v37, 0  ;;  %v2364_v5 = vsel %vm2124_vm1, %v1529_v49, 0  ;;  %v913_v47 = vcombine.high %v4829_v53, %v4832_v15  ;;  %v861_v21 = vcombine.high %v836_v48, %v852_v32  ;;  %v1551_v25 = vpop.permute.xlu1 %1550 }
 0x1f5   :  { %3966 = vmatpush3.bf16.xpose.msra.mxu1 %v2317_v43  ;;  %v1522_v60 = vcombine.low %v1503_v39, %v1519_v9  ;;  %v929_v38 = vcombine.high %v904_v55, %v920_v14  ;;  %v1455_v42 = vcombine.high %v1435_v57, %v1451_v59  ;;  %v1523_v4 = vcombine.high %v1503_v39, %v1519_v9 }
 0x1f6   :  { %3962 = vmatmul.mubr.msk.bf16.vlgmr.msra.gmra.mrb[16].mxu0 %vm2124_vm1, %v935_v34  ;;  %3977 = vmatprep.subr.bf16.mxu1 %v4314_v54  ;;  %v936_v26 = vpack.c.bf16 %v928_v51, %v860_v2  ;;  %v843_v27 = vrot.slane %v829_v41, %v4500_v18  ;;  %v859_v53 = vrot.slane %v845_v35, %v4500_v18 }
 0x1f7   :  { %3972 = vmatpush3.bf16.xpose.msra.mxu0 %v2364_v5  ;;  %3973 = vmatprep.mubr.msk.bf16.mxu0 %vm4315_vm0, %v4314_v54  ;;  %v1530_v22 = vpack.c.bf16 %v1522_v60, %v1454_v6  ;;  %v911_v15 = vrot.slane %v897_v10, %v4500_v18  ;;  %v927_v1 = vrot.slane %v913_v47, %v4500_v18 }
 0x1f8   :  { %3983 = vmatprep.subr.bf16.mxu0 %v4314_v54  ;;  %v937_v52 = vpack.c.bf16 %v929_v38, %v861_v21  ;;  %v1531_v7 = vpack.c.bf16 %v1523_v4, %v1455_v42  ;;  %v862_v29 = vcombine.low %v843_v27, %v859_v53  ;;  %v863_v50 = vcombine.high %v843_v27, %v859_v53  ;;  %v1563_v37 = vpop.permute.xlu1 %1562 }
 0x1f9   :  { %v2411_v8 = vsel %vm2124_vm1, %v1530_v22, 0  ;;  %v930_v30 = vcombine.low %v911_v15, %v927_v1  ;;  %v931_v48 = vcombine.high %v911_v15, %v927_v1  ;;  %v1572_v55 = vcombine.low %v4468_v61, %v1549_v20 }
 0x1fa   :  { %v2458_v28 = vsel %vm2124_vm1, %v1531_v7, 0  ;;  %v1573_v56 = vcombine.high %v4468_v61, %v1549_v20  ;;  %v1588_v46 = vcombine.low %v1537_v16, %v1561_v36  ;;  %v1589_v12 = vcombine.high %v1537_v16, %v1561_v36 }
 0x1fb   :  { %v938_v32 = vpack.c.bf16 %v930_v30, %v862_v29  ;;  %v939_v14 = vpack.c.bf16 %v931_v48, %v863_v50  ;;  %v1580_v17 = vrot.slane %v1572_v55, %v4495_v11  ;;  %v1640_v61 = vcombine.low %v4472_v63, %v1551_v25 }
 0x1fc   :  { %3968 = vmatmul.mubr.msk.bf16.vlgmr.msra.gmra.mrb[8].mxu1 %vm2124_vm1, %v936_v26  ;;  %v1587_v19 = vrot.slane %v1573_v56, %v4495_v11  ;;  %v1596_v23 = vrot.slane %v1588_v46, %v4495_v11  ;;  %v1603_v24 = vrot.slane %v1589_v12, %v4495_v11  ;;  %v1641_v31 = vcombine.high %v4472_v63, %v1551_v25 }
 0x1fd   :  { %3978 = vmatpush3.bf16.xpose.msra.mxu1 %v2411_v8  ;;  %3979 = vmatprep.mubr.msk.bf16.mxu1 %vm4315_vm0, %v4314_v54  ;;  %v1648_v57 = vrot.slane %v1640_v61, %v4495_v11  ;;  %v1656_v59 = vcombine.low %v1539_v44, %v1563_v37  ;;  %v1657_v39 = vcombine.high %v1539_v44, %v1563_v37 }
 0x1fe   :  { %3974 = vmatmul.mubr.msk.bf16.vlgmr.msra.gmra.mrb[20].mxu0 %vm2124_vm1, %v937_v52  ;;  %3989 = vmatprep.subr.bf16.mxu1 %v4314_v54  ;;  %v1604_v45 = vcombine.low %v1580_v17, %v1596_v23  ;;  %v1605_v3 = vcombine.high %v1580_v17, %v1596_v23  ;;  %v1620_v40 = vcombine.low %v1587_v19, %v1603_v24 }
 0x1ff   :  { %3984 = vmatpush3.bf16.xpose.msra.mxu0 %v2458_v28  ;;  %3985 = vmatprep.mubr.msk.bf16.mxu0 %vm4315_vm0, %v4314_v54  ;;  %v1621_v58 = vcombine.high %v1587_v19, %v1603_v24  ;;  %v1655_v13 = vrot.slane %v1641_v31, %v4495_v11  ;;  %v1664_v34 = vrot.slane %v1656_v59, %v4495_v11 }
 0x200   :  { %3995 = vmatprep.subr.bf16.mxu0 %v4314_v54  ;;  %v1612_v33 = vrot.slane %v1604_v45, %v4500_v18  ;;  %v1619_v41 = vrot.slane %v1605_v3, %v4500_v18  ;;  %v1628_v49 = vrot.slane %v1620_v40, %v4500_v18  ;;  %v1671_v43 = vrot.slane %v1657_v39, %v4495_v11 }
 0x201   :  { %v1635_v63 = vrot.slane %v1621_v58, %v4500_v18  ;;  %v1672_v21 = vcombine.low %v1648_v57, %v1664_v34  ;;  %v1673_v60 = vcombine.high %v1648_v57, %v1664_v34 }
 0x202   :  { %v1844_v35 = vcombine.low %v1612_v33, %v1619_v41  ;;  %v3828_v2 = vcombine.high %v1612_v33, %v1619_v41  ;;  %v1688_v38 = vcombine.low %v1655_v13, %v1671_v43  ;;  %v1689_v42 = vcombine.high %v1655_v13, %v1671_v43 }
 0x203   :  { %v1860_v51 = vcombine.low %v1628_v49, %v1635_v63  ;;  %v3829_v9 = vcombine.high %v1628_v49, %v1635_v63  ;;  %v1680_v22 = vrot.slane %v1672_v21, %v4500_v18  ;;  %v1687_v27 = vrot.slane %v1673_v60, %v4500_v18 }
 0x204   :  { %3980 = vmatmul.mubr.msk.bf16.vlgmr.msra.gmra.mrb[12].mxu1 %vm2124_vm1, %v938_v32  ;;  %v1851_v5 = vrot.slane %v1844_v35, %v4495_v11  ;;  %v1859_v6 = vrot.slane %v3828_v2, %v4495_v11  ;;  %v1696_v53 = vrot.slane %v1688_v38, %v4500_v18  ;;  %v1703_v15 = vrot.slane %v1689_v42, %v4500_v18 }
 0x205   :  { %3991 = vmatprep.mubr.msk.bf16.mxu1 %vm4315_vm0, %v4314_v54  ;;  %v1867_v10 = vrot.slane %v1860_v51, %v4495_v11  ;;  %v1875_v47 = vrot.slane %v3829_v9, %v4495_v11  ;;  %v1912_v1 = vcombine.low %v1680_v22, %v1687_v27  ;;  %v3830_v52 = vcombine.high %v1680_v22, %v1687_v27 }
 0x206   :  { %3986 = vmatmul.mubr.msk.bf16.vlgmr.msra.gmra.mrb[24].mxu0 %vm2124_vm1, %v939_v14  ;;  %v1876_v4 = vcombine.low %v1851_v5, %v1859_v6  ;;  %v1928_v7 = vcombine.low %v1696_v53, %v1703_v15  ;;  %v3831_v8 = vcombine.high %v1696_v53, %v1703_v15  ;;  %v1877_v19 = vcombine.high %v1851_v5, %v1859_v6 }
 0x207   :  { %3997 = vmatprep.mubr.msk.bf16.mxu0 %vm4315_vm0, %v4314_v54  ;;  %v1892_v26 = vcombine.low %v1867_v10, %v1875_v47  ;;  %v1919_v30 = vrot.slane %v1912_v1, %v4495_v11  ;;  %v1927_v16 = vrot.slane %v3830_v52, %v4495_v11  ;;  %v1893_v23 = vcombine.high %v1867_v10, %v1875_v47 }
 0x208   :  { %v1884_v28 = vrot.slane %v1876_v4, %v4500_v18  ;;  %v1935_v44 = vrot.slane %v1928_v7, %v4495_v11  ;;  %v1943_v50 = vrot.slane %v3831_v8, %v4495_v11  ;;  %v1891_v61 = vrot.slane %v1877_v19, %v4500_v18 }
 0x209   :  { %v1900_v29 = vrot.slane %v1892_v26, %v4500_v18  ;;  %v1944_v48 = vcombine.low %v1919_v30, %v1927_v16  ;;  %v1945_v24 = vcombine.high %v1919_v30, %v1927_v16  ;;  %v1907_v31 = vrot.slane %v1893_v23, %v4500_v18 }
 0x20a   :  { %v1960_v32 = vcombine.low %v1935_v44, %v1943_v50  ;;  %v1961_v25 = vcombine.high %v1935_v44, %v1943_v50 }
 0x20b   :  { %v1908_v20 = vcombine.low %v1884_v28, %v1900_v29  ;;  %v1952_v36 = vrot.slane %v1944_v48, %v4500_v18  ;;  %v1909_v56 = vcombine.high %v1884_v28, %v1900_v29  ;;  %v1959_v45 = vrot.slane %v1945_v24, %v4500_v18 }
 0x20c   :  { %v1968_v55 = vrot.slane %v1960_v32, %v4500_v18  ;;  %v1975_v3 = vrot.slane %v1961_v25, %v4500_v18  ;;  %v1910_v40 = vcombine.low %v1891_v61, %v1907_v31  ;;  %v1911_v33 = vcombine.high %v1891_v61, %v1907_v31  ;;  %v5040_v25 = vpop.permute.xlu1 %1540 }
 0x20e   :  { %v1976_v46 = vcombine.low %v1952_v36, %v1968_v55  ;;  %v1977_v12 = vcombine.high %v1952_v36, %v1968_v55  ;;  %v1978_v58 = vcombine.low %v1959_v45, %v1975_v3  ;;  %v1979_v41 = vcombine.high %v1959_v45, %v1975_v3 }
 0x210   :  { %v2116_v14 = vpack.c.bf16 %v1976_v46, %v1908_v20  ;;  %v2117_v17 = vpack.c.bf16 %v1977_v12, %v1909_v56  ;;  %v4964_v57 = vpack.c.bf16 %v1978_v58, %v1910_v40  ;;  %v4966_v13 = vpack.c.bf16 %v1979_v41, %v1911_v33 }
 0x212   :  { %3990 = vmatpush3.bf16.msra.mxu1 %v2116_v14  ;;  %3996 = vmatpush3.bf16.msra.mxu0 %v2117_v17 }
 0x213   :  { %4001 = vmatprep.subr.bf16.mxu1 %v4314_v54  ;;  %4007 = vmatprep.subr.bf16.mxu0 %v4314_v54 }
 0x2ae   :  { %v4968_v37 = vpop.f32.mrb[8].mxu0 }
 0x2af   :  { %v3945_v49 = vpop.f32.mrb[9].mxu0  ;;  %v2502_v63 = vsel %vm2501_vm2, %v4968_v37, -inf }
 0x2b0   :  { %2503 = vmax.xlane.f32.xlu0 %v2502_v63  ;;  %v4972_v59 = vpop.f32.mrb[10].mxu0 }
 0x2b1   :  { %v4974_v39 = vpop.f32.mrb[4].mxu1  ;;  %v3946_v35 = vpop.f32.mrb[11].mxu0  ;;  %v2505_v5 = vsel %vm2501_vm2, %v4972_v59, -inf }
 0x2b2   :  { %v3957_v2 = vpop.f32.mrb[5].mxu1  ;;  %v2514_v51 = vsel %vm2501_vm2, %v4974_v39, -inf }
 0x2b3   :  { %2515 = vmax.xlane.f32.xlu1 %v2514_v51  ;;  %v4978_v9 = vpop.f32.mrb[6].mxu1 }
 0x2b4   :  { %v3958_v34 = vpop.f32.mrb[7].mxu1  ;;  %v2517_v43 = vsel %vm2501_vm2, %v4978_v9, -inf }
 0x2b5   :  { %2518 = vmax.xlane.f32.xlu0 %v2517_v43 }
 0x2b7   :  { %2506 = vmax.xlane.f32.xlu1 %v2505_v5 }
 0x2ba   :  { %v4984_v6 = vpop.f32.mrb[12].mxu0 }
 0x2bb   :  { %v3951_v10 = vpop.f32.mrb[13].mxu0  ;;  %v2508_v47 = vsel %vm2501_vm2, %v4984_v6, -inf }
 0x2bc   :  { %2509 = vmax.xlane.f32.xlu0 %v2508_v47  ;;  %v4988_v21 = vpop.f32.mrb[14].mxu0 }
 0x2bd   :  { %v3952_v60 = vpop.f32.mrb[15].mxu0  ;;  %v2511_v38 = vsel %vm2501_vm2, %v4988_v21, -inf }
 0x2c0   :  { %2512 = vmax.xlane.f32.xlu0 %v2511_v38 }
 0x2c9   :  { %v4992_v42 = vpop.f32.mrb[16].mxu0 }
 0x2ca   :  { %v3963_v4 = vpop.f32.mrb[17].mxu0  ;;  %v2520_v16 = vsel %vm2501_vm2, %v4992_v42, -inf }
 0x2cb   :  { %v4994_v26 = vpop.f32.mrb[18].mxu0 }
 0x2cc   :  { %v3964_v22 = vpop.f32.mrb[19].mxu0  ;;  %v2523_v44 = vsel %vm2501_vm2, %v4994_v26, -inf }
 0x2cf   :  { %v4996_v27 = vpop.f32.mrb[8].mxu1 }
 0x2d0   :  { %v3969_v53 = vpop.f32.mrb[9].mxu1  ;;  %v2526_v15 = vsel %vm2501_vm2, %v4996_v27, -inf }
 0x2d1   :  { %v5000_v1 = vpop.f32.mrb[20].mxu0  ;;  %2527 = vmax.xlane.f32.xlu1 %v2526_v15  ;;  %v5002_v52 = vpop.f32.mrb[10].mxu1 }
 0x2d2   :  { %v3975_v7 = vpop.f32.mrb[21].mxu0  ;;  %v3970_v8 = vpop.f32.mrb[11].mxu1  ;;  %v2529_v28 = vsel %vm2501_vm2, %v5002_v52, -inf  ;;  %v2532_v17 = vsel %vm2501_vm2, %v5000_v1, -inf }
 0x2d3   :  { %v5006_v29 = vpop.f32.mrb[22].mxu0  ;;  %2530 = vmax.xlane.f32.xlu0 %v2529_v28 }
 0x2d4   :  { %v3976_v30 = vpop.f32.mrb[23].mxu0  ;;  %v2535_v19 = vsel %vm2501_vm2, %v5006_v29, -inf }
 0x2d5   :  { %2521 = vmax.xlane.f32.xlu1 %v2520_v16 }
 0x2d7   :  { %2524 = vmax.xlane.f32.xlu0 %v2523_v44  ;;  %v5012_v50 = vpop.f32.mrb[12].mxu1 }
 0x2d8   :  { %v3981_v48 = vpop.f32.mrb[13].mxu1  ;;  %v2538_v32 = vsel %vm2501_vm2, %v5012_v50, -inf }
 0x2d9   :  { %v5016_v20 = vpop.f32.mrb[24].mxu0  ;;  %2539 = vmax.xlane.f32.xlu1 %v2538_v32  ;;  %v5018_v36 = vpop.f32.mrb[14].mxu1 }
 0x2da   :  { %v3987_v55 = vpop.f32.mrb[25].mxu0  ;;  %v3982_v56 = vpop.f32.mrb[15].mxu1  ;;  %v2541_v46 = vsel %vm2501_vm2, %v5018_v36, -inf  ;;  %v2544_v23 = vsel %vm2501_vm2, %v5016_v20, -inf }
 0x2db   :  { %v5022_v12 = vpop.f32.mrb[26].mxu0  ;;  %2542 = vmax.xlane.f32.xlu0 %v2541_v46 }
 0x2dc   :  { %v3988_v14 = vpop.f32.mrb[27].mxu0  ;;  %v2547_v24 = vsel %vm2501_vm2, %v5022_v12, -inf }
 0x2dd   :  { %2533 = vmax.xlane.f32.xlu1 %v2532_v17 }
 0x2df   :  { %2536 = vmax.xlane.f32.xlu0 %v2535_v19 }
 0x2ee   :  { %1552 = vrot.lane.b32.xlu1 %v4484_v0, %s4309_s0 }
 0x2f5   :  { %1542 = vrot.lane.b32.xlu0 %v4470_v62, %s4312_s9 }
 0x312   :  { %2545 = vmax.xlane.f32.xlu1 %v2544_v23 }
 0x314   :  { %2548 = vmax.xlane.f32.xlu0 %v2547_v24 }
 0x323   :  { %1554 = vrot.lane.b32.xlu1 %v4470_v62, %s4309_s0 }
 0x32a   :  { %1564 = vrot.lane.b32.xlu0 %v4484_v0, %s4313_s2 }
 0x33d   :  { %v2504_v61 = vpop.xlane.xlu0 %2503 }
 0x33e   :  { %v2550_v31 = vsub.f32 %v4968_v37, %v2504_v61 }
 0x340   :  { %v2516_v45 = vpop.xlane.xlu1 %2515  ;;  %v2566_v3 = vmul.f32 1.442695, %v2550_v31 }
 0x341   :  { %v2554_v40 = vsub.f32 %v4974_v39, %v2516_v45 }
 0x342   :  { %4144 = vpow2.f32 %v2566_v3  ;;  %v2519_v58 = vpop.xlane.xlu0 %2518 }
 0x343   :  { %v2574_v33 = vmul.f32 1.442695, %v2554_v40  ;;  %v2555_v41 = vsub.f32 %v4978_v9, %v2519_v58 }
 0x344   :  { %v2507_v49 = vpop.xlane.xlu1 %2506 }
 0x345   :  { %4146 = vpow2.f32 %v2574_v33  ;;  %v2551_v63 = vsub.f32 %v4972_v59, %v2507_v49  ;;  %v2576_v35 = vmul.f32 1.442695, %v2555_v41 }
 0x347   :  { %v2568_v2 = vmul.f32 1.442695, %v2551_v63  ;;  %4148 = vpow2.f32 %v2576_v35 }
 0x349   :  { %4150 = vpow2.f32 %v2568_v2  ;;  %v2510_v51 = vpop.xlane.xlu0 %2509 }
 0x34a   :  { %v2552_v37 = vsub.f32 %v4984_v6, %v2510_v51 }
 0x34c   :  { %v5047_v34 = vpop.eup %4144  ;;  %v2570_v43 = vmul.f32 1.442695, %v2552_v37 }
 0x34d   :  { %v2513_v39 = vpop.xlane.xlu0 %2512  ;;  %v2598_v5 = vsel %vm2501_vm2, %v5047_v34, 0.0 }
 0x34e   :  { %4152 = vpow2.f32 %v2570_v43  ;;  %v2553_v9 = vsub.f32 %v4988_v21, %v2513_v39  ;;  %2599 = vadd.xlane.f32.xlu1 %v2598_v5 }
 0x34f   :  { %v5052_v10 = vpop.eup %4146 }
 0x350   :  { %v2572_v59 = vmul.f32 1.442695, %v2553_v9  ;;  %v2610_v47 = vsel %vm2501_vm2, %v5052_v10, 0.0 }
 0x351   :  { %v5056_v60 = vpop.eup %4148  ;;  %2611 = vadd.xlane.f32.xlu0 %v2610_v47 }
 0x352   :  { %4154 = vpow2.f32 %v2572_v59  ;;  %v2613_v6 = vsel %vm2501_vm2, %v5056_v60, 0.0 }
 0x353   :  { %v5060_v38 = vpop.eup %4150  ;;  %2614 = vadd.xlane.f32.xlu1 %v2613_v6 }
 0x354   :  { %v2601_v21 = vsel %vm2501_vm2, %v5060_v38, 0.0 }
 0x355   :  { %2602 = vadd.xlane.f32.xlu0 %v2601_v21 }
 0x358   :  { %v5064_v4 = vpop.eup %4152 }
 0x359   :  { %v2604_v22 = vsel %vm2501_vm2, %v5064_v4, 0.0 }
 0x35a   :  { %2605 = vadd.xlane.f32.xlu1 %v2604_v22 }
 0x35c   :  { %v5068_v53 = vpop.eup %4154 }
 0x35d   :  { %v2607_v15 = vsel %vm2501_vm2, %v5068_v53, 0.0 }
 0x35e   :  { %2608 = vadd.xlane.f32.xlu0 %v2607_v15  ;;  %v2528_v7 = vpop.xlane.xlu1 %2527 }
 0x35f   :  { %v2558_v8 = vsub.f32 %v4996_v27, %v2528_v7 }
 0x360   :  { %v2531_v28 = vpop.xlane.xlu0 %2530 }
 0x361   :  { %v2582_v30 = vmul.f32 1.442695, %v2558_v8  ;;  %v2559_v16 = vsub.f32 %v5002_v52, %v2531_v28 }
 0x362   :  { %v2522_v44 = vpop.xlane.xlu1 %2521 }
 0x363   :  { %4156 = vpow2.f32 %v2582_v30  ;;  %v2584_v48 = vmul.f32 1.442695, %v2559_v16  ;;  %v2556_v32 = vsub.f32 %v4992_v42, %v2522_v44 }
 0x364   :  { %v2525_v55 = vpop.xlane.xlu0 %2524 }
 0x365   :  { %4158 = vpow2.f32 %v2584_v48  ;;  %v2578_v56 = vmul.f32 1.442695, %v2556_v32  ;;  %v2557_v46 = vsub.f32 %v4994_v26, %v2525_v55 }
 0x366   :  { %v2540_v14 = vpop.xlane.xlu1 %2539 }
 0x367   :  { %4160 = vpow2.f32 %v2578_v56  ;;  %v2580_v17 = vmul.f32 1.442695, %v2557_v46  ;;  %v2562_v19 = vsub.f32 %v5012_v50, %v2540_v14 }
 0x368   :  { %v2543_v27 = vpop.xlane.xlu0 %2542 }
 0x369   :  { %v2590_v23 = vmul.f32 1.442695, %v2562_v19  ;;  %4162 = vpow2.f32 %v2580_v17  ;;  %v2563_v37 = vsub.f32 %v5018_v36, %v2543_v27 }
 0x36a   :  { %v2534_v24 = vpop.xlane.xlu1 %2533 }
 0x36b   :  { %v2560_v52 = vsub.f32 %v5000_v1, %v2534_v24  ;;  %4164 = vpow2.f32 %v2590_v23  ;;  %v2592_v5 = vmul.f32 1.442695, %v2563_v37 }
 0x36c   :  { %v2537_v61 = vpop.xlane.xlu0 %2536 }
 0x36d   :  { %v5078_v31 = vpop.eup %4156  ;;  %v2586_v42 = vmul.f32 1.442695, %v2560_v52  ;;  %v2561_v45 = vsub.f32 %v5006_v29, %v2537_v61 }
 0x36e   :  { %v2622_v26 = vsel %vm2501_vm2, %v5078_v31, 0.0  ;;  %v5110_v43 = vpop.permute.xlu1 %1552 }
 0x36f   :  { %v5083_v3 = vpop.eup %4158  ;;  %4166 = vpow2.f32 %v2586_v42  ;;  %v2588_v50 = vmul.f32 1.442695, %v2561_v45  ;;  %2623 = vadd.xlane.f32.xlu1 %v2622_v26 }
 0x370   :  { %v2625_v40 = vsel %vm2501_vm2, %v5083_v3, 0.0  ;;  %v5112_v39 = vpop.permute.xlu0 %1542 }
 0x371   :  { %v5087_v58 = vpop.eup %4160  ;;  %2626 = vadd.xlane.f32.xlu0 %v2625_v40  ;;  %4168 = vpow2.f32 %v2588_v50 }
 0x372   :  { %v2616_v1 = vsel %vm2501_vm2, %v5087_v58, 0.0  ;;  %4170 = vpow2.f32 %v2592_v5 }
 0x373   :  { %v5091_v29 = vpop.eup %4162 }
 0x374   :  { %v2619_v41 = vsel %vm2501_vm2, %v5091_v29, 0.0 }
 0x375   :  { %2617 = vadd.xlane.f32.xlu0 %v2616_v1  ;;  %v5093_v33 = vpop.eup %4164 }
 0x376   :  { %v2634_v35 = vsel %vm2501_vm2, %v5093_v33, 0.0 }
 0x379   :  { %v5097_v49 = vpop.eup %4166  ;;  %2620 = vadd.xlane.f32.xlu0 %v2619_v41 }
 0x37a   :  { %v2628_v63 = vsel %vm2501_vm2, %v5097_v49, 0.0 }
 0x37b   :  { %2629 = vadd.xlane.f32.xlu1 %v2628_v63  ;;  %v5103_v2 = vpop.eup %4168 }
 0x37c   :  { %v2631_v51 = vsel %vm2501_vm2, %v5103_v2, 0.0  ;;  %v5116_v15 = vpop.eup %4170 }
 0x37d   :  { %2635 = vadd.xlane.f32.xlu0 %v2634_v35  ;;  %v2637_v36 = vsel %vm2501_vm2, %v5116_v15, 0.0 }
 0x381   :  { %2632 = vadd.xlane.f32.xlu0 %v2631_v51 }
 0x38c   :  { %1566 = vrot.lane.b32.xlu1 %v4470_v62, %s4313_s2 }
 0x39f   :  { %v2546_v9 = vpop.xlane.xlu1 %2545 }
 0x3a0   :  { %v2564_v59 = vsub.f32 %v5016_v20, %v2546_v9 }
 0x3a1   :  { %v2549_v47 = vpop.xlane.xlu0 %2548 }
 0x3a2   :  { %v2594_v6 = vmul.f32 1.442695, %v2564_v59  ;;  %v2565_v21 = vsub.f32 %v5022_v12, %v2549_v47 }
 0x3a3   :  { %v5128_v12 = vpop.permute.xlu1 %1554 }
 0x3a4   :  { %4172 = vpow2.f32 %v2594_v6  ;;  %v2596_v22 = vmul.f32 1.442695, %v2565_v21  ;;  %v1776_v21 = vcombine.low %v4470_v62, %v5128_v12 }
 0x3a5   :  { %v1565_v30 = vpop.permute.xlu0 %1564 }
 0x3a6   :  { %4174 = vpow2.f32 %v2596_v22  ;;  %v1777_v22 = vcombine.high %v4470_v62, %v5128_v12 }
 0x3ae   :  { %v5118_v7 = vpop.eup %4172 }
 0x3af   :  { %v2640_v8 = vsel %vm2501_vm2, %v5118_v7, 0.0 }
 0x3b0   :  { %v5124_v28 = vpop.eup %4174  ;;  %2638 = vadd.xlane.f32.xlu1 %v2637_v36  ;;  %2641 = vadd.xlane.f32.xlu0 %v2640_v8 }
 0x3b1   :  { %v2643_v20 = vsel %vm2501_vm2, %v5124_v28, 0.0 }
 0x3b4   :  { %2644 = vadd.xlane.f32.xlu0 %v2643_v20 }
 0x3db   :  { %v2600_v16 = vpop.xlane.xlu1 %2599 }
 0x3dc   :  { %4176 = vrcp.f32 %v2600_v16 }
 0x3de   :  { %v2612_v44 = vpop.xlane.xlu0 %2611 }
 0x3e0   :  { %v2615_v48 = vpop.xlane.xlu1 %2614 }
 0x3e2   :  { %v2603_v32 = vpop.xlane.xlu0 %2602 }
 0x3e3   :  { %4178 = vrcp.f32 %v2603_v32 }
 0x3e4   :  { %4180 = vrcp.f32 %v2615_v48 }
 0x3e5   :  { %4182 = vrcp.f32 %v2612_v44 }
 0x3e6   :  { %v4177_v56 = vpop.eup %4176 }
 0x3e7   :  { %v2606_v55 = vpop.xlane.xlu1 %2605  ;;  %v2662_v17 = vmul.f32 %v4177_v56, %v5047_v34  ;;  %v1791_v56 = vrot.slane %v1777_v22, %v4495_v11 }
 0x3e8   :  { %4184 = vrcp.f32 %v2606_v55  ;;  %v1784_v55 = vrot.slane %v1776_v21, %v4495_v11 }
 0x3eb   :  { %v2609_v46 = vpop.xlane.xlu0 %2608 }
 0x3ec   :  { %4186 = vrcp.f32 %v2609_v46 }
 0x3ed   :  { %v4179_v14 = vpop.eup %4178 }
 0x3ee   :  { %v2663_v19 = vmul.f32 %v4179_v14, %v5060_v38  ;;  %v4181_v23 = vpop.eup %4180 }
 0x3ef   :  { %v4183_v24 = vpop.eup %4182  ;;  %v2667_v61 = vmul.f32 %v4181_v23, %v5056_v60  ;;  %v1708_v60 = vcombine.low %v4484_v0, %v5110_v43 }
 0x3f0   :  { %v2678_v27 = vpack.c.bf16 %v2663_v19, %v2662_v17  ;;  %v2666_v34 = vmul.f32 %v4183_v24, %v5052_v10  ;;  %v1725_v10 = vcombine.high %v5040_v25, %v1565_v30 }
 0x3f2   :  { %3992 = vmatmul.mubr.msk.bf16.vlgmr.msra.gmra.mrb[16].mxu1 %vm2501_vm2, %v2678_v27  ;;  %v4185_v52 = vpop.eup %4184  ;;  %v2680_v26 = vpack.c.bf16 %v2667_v61, %v2666_v34  ;;  %v1739_v1 = vrot.slane %v1725_v10, %v4495_v11 }
 0x3f3   :  { %4002 = vmatpush3.bf16.msra.mxu1 %v4964_v57  ;;  %4003 = vmatprep.mubr.msk.bf16.mxu1 %vm4315_vm0, %v4314_v54  ;;  %v2664_v38 = vmul.f32 %v4185_v52, %v5064_v4  ;;  %v1724_v57 = vcombine.low %v5040_v25, %v1565_v30  ;;  %v1709_v4 = vcombine.high %v4484_v0, %v5110_v43 }
 0x3f4   :  { %4013 = vmatprep.subr.bf16.mxu1 %v4314_v54 }
 0x3f5   :  { %v1732_v40 = vrot.slane %v1724_v57, %v4495_v11  ;;  %v1723_v41 = vrot.slane %v1709_v4, %v4495_v11 }
 0x3f6   :  { %v4187_v42 = vpop.eup %4186 }
 0x3f7   :  { %v2665_v45 = vmul.f32 %v4187_v42, %v5068_v53  ;;  %v1756_v51 = vcombine.low %v1723_v41, %v1739_v1  ;;  %v1757_v37 = vcombine.high %v1723_v41, %v1739_v1 }
 0x3f9   :  { %v2679_v50 = vpack.c.bf16 %v2665_v45, %v2664_v38  ;;  %v1764_v43 = vrot.slane %v1756_v51, %v4500_v18  ;;  %v1771_v47 = vrot.slane %v1757_v37, %v4500_v18 }
 0x3fa   :  { %4004 = vmatmul.mubr.msk.bf16.vlgmr.msra.gmra.mrb[20].mxu1 %vm2501_vm2, %v2680_v26 }
 0x3fb   :  { %3998 = vmatmul.mubr.msk.bf16.vlgmr.msra.gmra.mrb[28].mxu0 %vm2501_vm2, %v2679_v50  ;;  %4015 = vmatprep.mubr.msk.bf16.mxu1 %vm4315_vm0, %v4314_v54  ;;  %v1996_v30 = vcombine.low %v1764_v43, %v1771_v47  ;;  %v3833_v16 = vcombine.high %v1764_v43, %v1771_v47 }
 0x3fc   :  { %4008 = vmatpush3.bf16.msra.mxu0 %v4966_v13  ;;  %4009 = vmatprep.mubr.msk.bf16.mxu0 %vm4315_vm0, %v4314_v54  ;;  %v1716_v13 = vrot.slane %v1708_v60, %v4495_v11  ;;  %v2624_v5 = vpop.xlane.xlu1 %2623 }
 0x3fd   :  { %4019 = vmatprep.subr.bf16.mxu0 %v4314_v54  ;;  %v2003_v27 = vrot.slane %v1996_v30, %v4495_v11 }
 0x3fe   :  { %v2627_v53 = vpop.xlane.xlu0 %2626  ;;  %v1740_v35 = vcombine.low %v1716_v13, %v1732_v40  ;;  %v1741_v25 = vcombine.high %v1716_v13, %v1732_v40 }
 0x400   :  { %v1748_v59 = vrot.slane %v1740_v35, %v4500_v18  ;;  %v1755_v0 = vrot.slane %v1741_v25, %v4500_v18 }
 0x402   :  { %v2618_v63 = vpop.xlane.xlu0 %2617  ;;  %v1980_v8 = vcombine.low %v1748_v59, %v1755_v0  ;;  %v3832_v20 = vcombine.high %v1748_v59, %v1755_v0 }
 0x403   :  { %4188 = vrcp.f32 %v2618_v63 }
 0x404   :  { %v1987_v62 = vrot.slane %v1980_v8, %v4495_v11  ;;  %v1995_v19 = vrot.slane %v3832_v20, %v4495_v11 }
 0x406   :  { %v2621_v9 = vpop.xlane.xlu0 %2620  ;;  %v2012_v60 = vcombine.low %v1987_v62, %v1995_v19  ;;  %v2013_v37 = vcombine.high %v1987_v62, %v1995_v19 }
 0x407   :  { %4190 = vrcp.f32 %v2621_v9 }
 0x408   :  { %v2630_v6 = vpop.xlane.xlu1 %2629  ;;  %4192 = vrcp.f32 %v2624_v5  ;;  %v2020_v25 = vrot.slane %v2012_v60, %v4500_v18 }
 0x409   :  { %4194 = vrcp.f32 %v2627_v53 }
 0x40a   :  { %v5167_v36 = vpop.xlane.xlu0 %2635 }
 0x40c   :  { %v1567_v44 = vpop.permute.xlu1 %1566 }
 0x40d   :  { %v1792_v48 = vcombine.low %v5112_v39, %v1567_v44  ;;  %v1793_v32 = vcombine.high %v5112_v39, %v1567_v44  ;;  %v4189_v14 = vpop.eup %4188  ;;  %v2011_v39 = vrot.slane %v3833_v16, %v4495_v11  ;;  %v2027_v16 = vrot.slane %v2013_v37, %v4500_v18 }
 0x40e   :  { %v2633_v46 = vpop.xlane.xlu0 %2632  ;;  %v2668_v34 = vmul.f32 %v4189_v14, %v5087_v58 }
 0x40f   :  { %v1800_v12 = vrot.slane %v1792_v48, %v4495_v11  ;;  %v1807_v17 = vrot.slane %v1793_v32, %v4495_v11  ;;  %4196 = vrcp.f32 %v2633_v46  ;;  %v2028_v4 = vcombine.low %v2003_v27, %v2011_v39 }
 0x410   :  { %4198 = vrcp.f32 %v2630_v6  ;;  %v2029_v5 = vcombine.high %v2003_v27, %v2011_v39 }
 0x411   :  { %v4191_v23 = vpop.eup %4190  ;;  %v1808_v24 = vcombine.low %v1784_v55, %v1800_v12  ;;  %v1809_v52 = vcombine.high %v1784_v55, %v1800_v12  ;;  %v1824_v61 = vcombine.low %v1791_v56, %v1807_v17  ;;  %v1825_v42 = vcombine.high %v1791_v56, %v1807_v17 }
 0x412   :  { %v2669_v38 = vmul.f32 %v4191_v23, %v5091_v29  ;;  %v4193_v35 = vpop.eup %4192  ;;  %v2036_v51 = vrot.slane %v2028_v4, %v4500_v18  ;;  %v2043_v44 = vrot.slane %v2029_v5, %v4500_v18  ;;  %4200 = vrcp.f32 %v5167_v36 }
 0x413   :  { %v1816_v45 = vrot.slane %v1808_v24, %v4500_v18  ;;  %v1823_v26 = vrot.slane %v1809_v52, %v4500_v18  ;;  %v1832_v50 = vrot.slane %v1824_v61, %v4500_v18  ;;  %v1839_v57 = vrot.slane %v1825_v42, %v4500_v18  ;;  %v4195_v9 = vpop.eup %4194 }
 0x414   :  { %v2681_v10 = vpack.c.bf16 %v2669_v38, %v2668_v34  ;;  %v2044_v48 = vcombine.low %v2020_v25, %v2036_v51  ;;  %v2045_v55 = vcombine.high %v2020_v25, %v2036_v51  ;;  %v2671_v46 = vmul.f32 %v4195_v9, %v5083_v3 }
 0x415   :  { %v2048_v53 = vcombine.low %v1816_v45, %v1823_v26  ;;  %v3834_v40 = vcombine.high %v1816_v45, %v1823_v26  ;;  %v2064_v1 = vcombine.low %v1832_v50, %v1839_v57  ;;  %v3835_v13 = vcombine.high %v1832_v50, %v1839_v57 }
 0x416   :  { %4010 = vmatmul.mubr.msk.bf16.vlgmr.msra.gmra.mrb[32].mxu0 %vm2501_vm2, %v2681_v10  ;;  %v2670_v27 = vmul.f32 %v4193_v35, %v5078_v31  ;;  %v2046_v23 = vcombine.low %v2027_v16, %v2043_v44  ;;  %v2047_v24 = vcombine.high %v2027_v16, %v2043_v44 }
 0x417   :  { %v2055_v58 = vrot.slane %v2048_v53, %v4495_v11  ;;  %v2063_v29 = vrot.slane %v3834_v40, %v4495_v11  ;;  %v2071_v41 = vrot.slane %v2064_v1, %v4495_v11  ;;  %v2079_v63 = vrot.slane %v3835_v13, %v4495_v11  ;;  %4021 = vmatprep.mubr.msk.bf16.mxu0 %vm4315_vm0, %v4314_v54 }
 0x418   :  { %v2682_v52 = vpack.c.bf16 %v2671_v46, %v2670_v27 }
 0x419   :  { %v2080_v59 = vcombine.low %v2055_v58, %v2063_v29  ;;  %v2096_v0 = vcombine.low %v2071_v41, %v2079_v63  ;;  %v2081_v43 = vcombine.high %v2055_v58, %v2063_v29  ;;  %v2097_v47 = vcombine.high %v2071_v41, %v2079_v63  ;;  %v4197_v6 = vpop.eup %4196 }
 0x41a   :  { %v4199_v30 = vpop.eup %4198  ;;  %v2673_v14 = vmul.f32 %v4197_v6, %v5103_v2 }
 0x41b   :  { %v2088_v21 = vrot.slane %v2080_v59, %v4500_v18  ;;  %v2104_v22 = vrot.slane %v2096_v0, %v4500_v18  ;;  %v2095_v8 = vrot.slane %v2081_v43, %v4500_v18  ;;  %v2111_v20 = vrot.slane %v2097_v47, %v4500_v18 }
 0x41c   :  { %v2672_v39 = vmul.f32 %v4199_v30, %v5097_v49  ;;  %v4201_v34 = vpop.eup %4200 }
 0x41d   :  { %v2112_v32 = vcombine.low %v2088_v21, %v2104_v22  ;;  %v2113_v56 = vcombine.high %v2088_v21, %v2104_v22  ;;  %v2114_v17 = vcombine.low %v2095_v8, %v2111_v20  ;;  %v2115_v19 = vcombine.high %v2095_v8, %v2111_v20 }
 0x41e   :  { %v2683_v61 = vpack.c.bf16 %v2673_v14, %v2672_v39  ;;  %v2674_v45 = vmul.f32 %v4201_v34, %v5093_v33 }
 0x41f   :  { %v2120_v62 = vpack.c.bf16 %v2112_v32, %v2044_v48  ;;  %v2121_v12 = vpack.c.bf16 %v2113_v56, %v2045_v55  ;;  %v2122_v3 = vpack.c.bf16 %v2114_v17, %v2046_v23  ;;  %v2123_v2 = vpack.c.bf16 %v2115_v19, %v2047_v24 }
 0x421   :  { %4014 = vmatpush3.bf16.msra.mxu1 %v2120_v62  ;;  %4020 = vmatpush3.bf16.msra.mxu0 %v2121_v12 }
 0x422   :  { %4025 = vmatprep.subr.bf16.mxu1 %v4314_v54  ;;  %4031 = vmatprep.subr.bf16.mxu0 %v4314_v54 }
 0x424   :  { %4016 = vmatmul.mubr.msk.bf16.vlgmr.msra.gmra.mrb[24].mxu1 %vm2501_vm2, %v2682_v52  ;;  %4022 = vmatmul.mubr.msk.bf16.vlgmr.msra.gmra.mrb[36].mxu0 %vm2501_vm2, %v2683_v61 }
 0x425   :  { %4026 = vmatpush3.bf16.msra.mxu1 %v2122_v3  ;;  %4032 = vmatpush3.bf16.msra.mxu0 %v2123_v2 }
 0x426   :  { %4027 = vmatprep.mubr.msk.bf16.mxu1 %vm4315_vm0, %v4314_v54  ;;  %4033 = vmatprep.mubr.msk.bf16.mxu0 %vm4315_vm0, %v4314_v54 }
 0x43d   :  { %v2639_v31 = vpop.xlane.xlu1 %2638  ;;  %v2642_v49 = vpop.xlane.xlu0 %2641 }
 0x43e   :  { %4202 = vrcp.f32 %v2639_v31 }
 0x43f   :  { %4204 = vrcp.f32 %v2642_v49 }
 0x441   :  { %v2645_v42 = vpop.xlane.xlu0 %2644 }
 0x442   :  { %4206 = vrcp.f32 %v2645_v42 }
 0x448   :  { %v4203_v38 = vpop.eup %4202 }
 0x449   :  { %v2675_v26 = vmul.f32 %v4203_v38, %v5116_v15  ;;  %v4205_v50 = vpop.eup %4204 }
 0x44a   :  { %v2676_v60 = vmul.f32 %v4205_v50, %v5118_v7 }
 0x44b   :  { %v2684_v57 = vpack.c.bf16 %v2675_v26, %v2674_v45 }
 0x44c   :  { %v4207_v10 = vpop.eup %4206 }
 0x44d   :  { %v2677_v54 = vmul.f32 %v4207_v10, %v5124_v28  ;;  %4028 = vmatmul.mubr.msk.bf16.vlgmr.msra.gmra.mrb[28].mxu1 %vm2501_vm2, %v2684_v57 }
 0x44f   :  { %v2685_v36 = vpack.c.bf16 %v2677_v54, %v2676_v60 }
 0x451   :  { %4034 = vmatmul.mubr.msk.bf16.vlgmr.msra.gmra.mrb[40].mxu0 %vm2501_vm2, %v2685_v36 }
 0x4c5   :  { %v2723_v4 = vpop.f32.mrb[16].mxu1 }
 0x4c6   :  { %v3993_v53 = vpop.f32.mrb[17].mxu1 }
 0x4c7   :  { %v2726_v40 = vpop.f32.mrb[18].mxu1 }
 0x4c8   :  { %v3994_v1 = vpop.f32.mrb[19].mxu1 }
 0x4cd   :  { %v2811_v13 = vpop.f32.mrb[20].mxu1 }
 0x4ce   :  { %v2767_v33 = vpop.f32.mrb[28].mxu0  ;;  %v3038_v58 = vcombine.low %v2723_v4, %v2811_v13  ;;  %v3039_v15 = vcombine.high %v2723_v4, %v2811_v13  ;;  %v4005_v29 = vpop.f32.mrb[21].mxu1 }
 0x4cf   :  { %v3999_v41 = vpop.f32.mrb[29].mxu0  ;;  %v2814_v63 = vpop.f32.mrb[22].mxu1 }
 0x4d0   :  { %v2770_v35 = vpop.f32.mrb[30].mxu0  ;;  %v3106_v7 = vcombine.low %v2726_v40, %v2814_v63  ;;  %v3107_v25 = vcombine.high %v2726_v40, %v2814_v63  ;;  %v4006_v28 = vpop.f32.mrb[23].mxu1  ;;  %v3046_v0 = vrot.slane %v3038_v58, %v4495_v11  ;;  %v3053_v43 = vrot.slane %v3039_v15, %v4495_v11 }
 0x4d1   :  { %v4000_v51 = vpop.f32.mrb[31].mxu0 }
 0x4d2   :  { %v3114_v32 = vrot.slane %v3106_v7, %v4495_v11  ;;  %v3121_v55 = vrot.slane %v3107_v25, %v4495_v11 }
 0x4e9   :  { %v2855_v37 = vpop.f32.mrb[32].mxu0 }
 0x4ea   :  { %v3054_v5 = vcombine.low %v2767_v33, %v2855_v37  ;;  %v3055_v9 = vcombine.high %v2767_v33, %v2855_v37  ;;  %v4011_v59 = vpop.f32.mrb[33].mxu0 }
 0x4eb   :  { %v2858_v47 = vpop.f32.mrb[34].mxu0 }
 0x4ec   :  { %v3062_v6 = vrot.slane %v3054_v5, %v4495_v11  ;;  %v3069_v21 = vrot.slane %v3055_v9, %v4495_v11  ;;  %v3122_v22 = vcombine.low %v2770_v35, %v2858_v47  ;;  %v3123_v8 = vcombine.high %v2770_v35, %v2858_v47  ;;  %v4012_v20 = vpop.f32.mrb[35].mxu0 }
 0x4ed   :  { %v4137_v20 = vld [vmem:[#allocation7 + $0x8] sm:$0xff]  }
 0x4ee   :  { %v3070_v30 = vcombine.low %v3046_v0, %v3062_v6  ;;  %v3071_v16 = vcombine.high %v3046_v0, %v3062_v6  ;;  %v3086_v44 = vcombine.low %v3053_v43, %v3069_v21  ;;  %v3087_v48 = vcombine.high %v3053_v43, %v3069_v21 }
 0x4ef   :  { %v3130_v56 = vrot.slane %v3122_v22, %v4495_v11  ;;  %v3137_v46 = vrot.slane %v3123_v8, %v4495_v11  ;;  %v4136_v8 = vld [vmem:[#allocation7] sm:$0xff]  }
 0x4f0   :  { %v3078_v14 = vrot.slane %v3070_v30, %v4500_v18  ;;  %v3085_v62 = vrot.slane %v3071_v16, %v4500_v18  ;;  %v3094_v12 = vrot.slane %v3086_v44, %v4500_v18  ;;  %v3101_v17 = vrot.slane %v3087_v48, %v4500_v18  ;;  %4037 = vmatprep.subr.bf16.mxu1 %v4136_v8 }
 0x4f1   :  { %v3138_v19 = vcombine.low %v3114_v32, %v3130_v56  ;;  %v3139_v27 = vcombine.high %v3114_v32, %v3130_v56  ;;  %v3154_v39 = vcombine.low %v3121_v55, %v3137_v46  ;;  %v3155_v23 = vcombine.high %v3121_v55, %v3137_v46  ;;  %4038 = vmatpush3.bf16.msra.mxu1 %v4136_v8 }
 0x4f2   :  { %v3310_v24 = vcombine.low %v3078_v14, %v3085_v62  ;;  %v3852_v52 = vcombine.high %v3078_v14, %v3085_v62  ;;  %v3326_v61 = vcombine.low %v3094_v12, %v3101_v17  ;;  %v3853_v3 = vcombine.high %v3094_v12, %v3101_v17  ;;  %4039 = vmatprep.subr.bf16.mxu1 %v4137_v20  ;;  %v4138_v14 = vld [vmem:[#allocation7 + $0x10] sm:$0xff]  }
 0x4f3   :  { %v3146_v2 = vrot.slane %v3138_v19, %v4500_v18  ;;  %v3153_v31 = vrot.slane %v3139_v27, %v4500_v18  ;;  %v3162_v49 = vrot.slane %v3154_v39, %v4500_v18  ;;  %v3169_v42 = vrot.slane %v3155_v23, %v4500_v18  ;;  %v4139_v19 = vld [vmem:[#allocation7 + $0x18] sm:$0xff]   ;;  %v4140_v27 = vld [vmem:[#allocation7 + $0x20] sm:$0xff]   ;;  %v4141_v39 = vld [vmem:[#allocation7 + $0x28] sm:$0xff]  }
 0x4f4   :  { %v3317_v34 = vrot.slane %v3310_v24, %v4495_v11  ;;  %v3325_v38 = vrot.slane %v3852_v52, %v4495_v11  ;;  %v3333_v45 = vrot.slane %v3326_v61, %v4495_v11  ;;  %v3341_v26 = vrot.slane %v3853_v3, %v4495_v11 }
 0x4f5   :  { %v3378_v50 = vcombine.low %v3146_v2, %v3153_v31  ;;  %v3854_v57 = vcombine.high %v3146_v2, %v3153_v31  ;;  %v3394_v10 = vcombine.low %v3162_v49, %v3169_v42  ;;  %v3855_v60 = vcombine.high %v3162_v49, %v3169_v42  ;;  %4040 = vmatpush3.bf16.msra.mxu1 %v4137_v20 }
 0x4f6   :  { %v3342_v54 = vcombine.low %v3317_v34, %v3325_v38  ;;  %v3358_v36 = vcombine.low %v3333_v45, %v3341_v26  ;;  %v3343_v4 = vcombine.high %v3317_v34, %v3325_v38  ;;  %v3359_v53 = vcombine.high %v3333_v45, %v3341_v26  ;;  %4041 = vmatprep.subr.bf16.mxu1 %v4138_v14 }
 0x4f7   :  { %v3385_v40 = vrot.slane %v3378_v50, %v4495_v11  ;;  %v3393_v1 = vrot.slane %v3854_v57, %v4495_v11  ;;  %v3401_v13 = vrot.slane %v3394_v10, %v4495_v11  ;;  %v3409_v33 = vrot.slane %v3855_v60, %v4495_v11  ;;  %v5243_v58 = vpop.f32.mrb[24].mxu1  ;;  %v5245_v15 = vpop.f32.mrb[36].mxu0 }
 0x4f8   :  { %v4017_v29 = vpop.f32.mrb[25].mxu1  ;;  %v4023_v41 = vpop.f32.mrb[37].mxu0  ;;  %v5248_v63 = vrot.slane %v3342_v54, %v4500_v18  ;;  %v5251_v35 = vrot.slane %v3358_v36, %v4500_v18  ;;  %v3357_v7 = vrot.slane %v3343_v4, %v4500_v18  ;;  %v3373_v25 = vrot.slane %v3359_v53, %v4500_v18 }
 0x4f9   :  { %v5255_v28 = vpop.f32.mrb[26].mxu1  ;;  %v5257_v51 = vpop.f32.mrb[38].mxu0  ;;  %v3410_v37 = vcombine.low %v3385_v40, %v3393_v1  ;;  %v3426_v5 = vcombine.low %v3401_v13, %v3409_v33  ;;  %v3411_v9 = vcombine.high %v3385_v40, %v3393_v1  ;;  %v3427_v59 = vcombine.high %v3401_v13, %v3409_v33  ;;  %4042 = vmatpush3.bf16.msra.mxu1 %v4138_v14 }
 0x4fa   :  { %v4018_v0 = vpop.f32.mrb[27].mxu1  ;;  %v4024_v43 = vpop.f32.mrb[39].mxu0  ;;  %v3374_v47 = vcombine.low %v5248_v63, %v5251_v35  ;;  %v3375_v6 = vcombine.high %v5248_v63, %v5251_v35  ;;  %v3376_v21 = vcombine.low %v3357_v7, %v3373_v25  ;;  %v3377_v22 = vcombine.high %v3357_v7, %v3373_v25  ;;  %4043 = vmatprep.subr.bf16.mxu1 %v4139_v19 }
 0x4fb   :  { %v5264_v30 = vrot.slane %v3410_v37, %v4500_v18  ;;  %v5267_v16 = vrot.slane %v3426_v5, %v4500_v18  ;;  %v3425_v44 = vrot.slane %v3411_v9, %v4500_v18  ;;  %v3441_v48 = vrot.slane %v3427_v59, %v4500_v18 }
 0x4fd   :  { %v3443_v32 = vcombine.high %v5264_v30, %v5267_v16  ;;  %v3442_v55 = vcombine.low %v5264_v30, %v5267_v16  ;;  %v3444_v56 = vcombine.low %v3425_v44, %v3441_v48  ;;  %v3445_v46 = vcombine.high %v3425_v44, %v3441_v48  ;;  %4044 = vmatpush3.bf16.msra.mxu1 %v4139_v19  ;;  %v3860_v30 = vld [vmem:[%s5356_s4] ss:$0 sm:$0xff] }
 0x4fe   :  { %4045 = vmatprep.subr.bf16.mxu1 %v4140_v27 }
 0x4ff   :  { %v4074_v62 = vpack.i.bf16 %v3443_v32, %v3375_v6  ;;  %v4079_v12 = vpack.i.bf16 %v3444_v56, %v3376_v21  ;;  %v5275_v17 = vpack.i.bf16 %v3445_v46, %v3377_v22 }
 0x501   :  { %4075 = vrot.lane.b32.xlu1 %v4074_v62, %s4313_s2  ;;  %4046 = vmatpush3.bf16.msra.mxu1 %v4140_v27 }
 0x502   :  { %4047 = vmatprep.subr.bf16.mxu1 %v4141_v39 }
 0x505   :  { %4080 = vrot.lane.b32.xlu1 %v4079_v12, %s4309_s0  ;;  %4048 = vmatpush3.bf16.msra.mxu1 %v4141_v39 }
 0x520   :  { %v2987_v23 = vpop.f32.mrb[28].mxu1 }
 0x521   :  { %v3174_v24 = vcombine.low %v5243_v58, %v2987_v23  ;;  %v3175_v52 = vcombine.high %v5243_v58, %v2987_v23  ;;  %v4029_v61 = vpop.f32.mrb[29].mxu1 }
 0x522   :  { %v2990_v3 = vpop.f32.mrb[30].mxu1 }
 0x523   :  { %v3242_v2 = vcombine.low %v5255_v28, %v2990_v3  ;;  %v3243_v31 = vcombine.high %v5255_v28, %v2990_v3  ;;  %v4030_v49 = vpop.f32.mrb[31].mxu1  ;;  %v3182_v26 = vrot.slane %v3174_v24, %v4495_v11  ;;  %v3189_v50 = vrot.slane %v3175_v52, %v4495_v11  ;;  %v4142_v24 = vld [vmem:[#allocation7 + $0x30] sm:$0xff]  }
 0x524   :  { %v3031_v42 = vpop.f32.mrb[40].mxu0  ;;  %4049 = vmatprep.subr.bf16.mxu1 %v4142_v24 }
 0x525   :  { %v3190_v34 = vcombine.low %v5245_v15, %v3031_v42  ;;  %v3191_v38 = vcombine.high %v5245_v15, %v3031_v42  ;;  %v4035_v45 = vpop.f32.mrb[41].mxu0  ;;  %v3250_v33 = vrot.slane %v3242_v2, %v4495_v11  ;;  %v3257_v58 = vrot.slane %v3243_v31, %v4495_v11  ;;  %4050 = vmatpush3.bf16.msra.mxu1 %v4142_v24 }
 0x526   :  { %v3034_v57 = vpop.f32.mrb[42].mxu0 }
 0x527   :  { %v3198_v10 = vrot.slane %v3190_v34, %v4495_v11  ;;  %v3205_v60 = vrot.slane %v3191_v38, %v4495_v11  ;;  %v3258_v54 = vcombine.low %v5257_v51, %v3034_v57  ;;  %v3259_v36 = vcombine.high %v5257_v51, %v3034_v57  ;;  %v4036_v4 = vpop.f32.mrb[43].mxu0 }
 0x529   :  { %v3206_v53 = vcombine.low %v3182_v26, %v3198_v10  ;;  %v3207_v40 = vcombine.high %v3182_v26, %v3198_v10  ;;  %v3222_v1 = vcombine.low %v3189_v50, %v3205_v60  ;;  %v3223_v13 = vcombine.high %v3189_v50, %v3205_v60 }
 0x52a   :  { %v3266_v15 = vrot.slane %v3258_v54, %v4495_v11  ;;  %v3273_v29 = vrot.slane %v3259_v36, %v4495_v11 }
 0x52b   :  { %v3214_v41 = vrot.slane %v3206_v53, %v4500_v18  ;;  %v3221_v7 = vrot.slane %v3207_v40, %v4500_v18  ;;  %v3230_v25 = vrot.slane %v3222_v1, %v4500_v18  ;;  %v3237_v28 = vrot.slane %v3223_v13, %v4500_v18  ;;  %v4143_v40 = vld [vmem:[#allocation7 + $0x38] sm:$0xff]  }
 0x52c   :  { %v3274_v51 = vcombine.low %v3250_v33, %v3266_v15  ;;  %v3275_v37 = vcombine.high %v3250_v33, %v3266_v15  ;;  %v3290_v5 = vcombine.low %v3257_v58, %v3273_v29  ;;  %v3291_v9 = vcombine.high %v3257_v58, %v3273_v29  ;;  %4051 = vmatprep.subr.bf16.mxu1 %v4143_v40 }
 0x52d   :  { %v3446_v59 = vcombine.low %v3214_v41, %v3221_v7  ;;  %v3856_v0 = vcombine.high %v3214_v41, %v3221_v7  ;;  %v3462_v43 = vcombine.low %v3230_v25, %v3237_v28  ;;  %v3857_v6 = vcombine.high %v3230_v25, %v3237_v28  ;;  %4052 = vmatpush3.bf16.msra.mxu1 %v4143_v40 }
 0x52e   :  { %v3282_v21 = vrot.slane %v3274_v51, %v4500_v18  ;;  %v3289_v22 = vrot.slane %v3275_v37, %v4500_v18  ;;  %v3298_v8 = vrot.slane %v3290_v5, %v4500_v18  ;;  %v3305_v20 = vrot.slane %v3291_v9, %v4500_v18 }
 0x52f   :  { %v3453_v44 = vrot.slane %v3446_v59, %v4495_v11  ;;  %v3461_v48 = vrot.slane %v3856_v0, %v4495_v11  ;;  %v3469_v32 = vrot.slane %v3462_v43, %v4495_v11  ;;  %v3477_v56 = vrot.slane %v3857_v6, %v4495_v11 }
 0x530   :  { %v3514_v46 = vcombine.low %v3282_v21, %v3289_v22  ;;  %v3858_v14 = vcombine.high %v3282_v21, %v3289_v22  ;;  %v3530_v62 = vcombine.low %v3298_v8, %v3305_v20  ;;  %v3859_v12 = vcombine.high %v3298_v8, %v3305_v20 }
 0x531   :  { %v3479_v19 = vcombine.high %v3453_v44, %v3461_v48  ;;  %v3495_v27 = vcombine.high %v3469_v32, %v3477_v56  ;;  %v3478_v39 = vcombine.low %v3453_v44, %v3461_v48  ;;  %v3494_v23 = vcombine.low %v3469_v32, %v3477_v56 }
 0x532   :  { %v3521_v52 = vrot.slane %v3514_v46, %v4495_v11  ;;  %v3529_v61 = vrot.slane %v3858_v14, %v4495_v11  ;;  %v3537_v3 = vrot.slane %v3530_v62, %v4495_v11  ;;  %v3545_v2 = vrot.slane %v3859_v12, %v4495_v11 }
 0x533   :  { %v3493_v31 = vrot.slane %v3479_v19, %v4500_v18  ;;  %v3509_v49 = vrot.slane %v3495_v27, %v4500_v18  ;;  %v3486_v42 = vrot.slane %v3478_v39, %v4500_v18  ;;  %v3502_v34 = vrot.slane %v3494_v23, %v4500_v18 }
 0x534   :  { %v3547_v38 = vcombine.high %v3521_v52, %v3529_v61  ;;  %v3563_v45 = vcombine.high %v3537_v3, %v3545_v2  ;;  %v3546_v26 = vcombine.low %v3521_v52, %v3529_v61  ;;  %v3562_v50 = vcombine.low %v3537_v3, %v3545_v2 }
 0x535   :  { %v3512_v57 = vcombine.low %v3493_v31, %v3509_v49  ;;  %v3510_v10 = vcombine.low %v3486_v42, %v3502_v34  ;;  %v3511_v60 = vcombine.high %v3486_v42, %v3502_v34  ;;  %v3513_v54 = vcombine.high %v3493_v31, %v3509_v49 }
 0x536   :  { %v3561_v11 = vrot.slane %v3547_v38, %v4500_v18  ;;  %v3577_v36 = vrot.slane %v3563_v45, %v4500_v18  ;;  %v3554_v4 = vrot.slane %v3546_v26, %v4500_v18  ;;  %v3570_v53 = vrot.slane %v3562_v50, %v4500_v18 }
 0x538   :  { %v3580_v1 = vcombine.low %v3561_v11, %v3577_v36  ;;  %v3579_v13 = vcombine.high %v3554_v4, %v3570_v53  ;;  %v3578_v33 = vcombine.low %v3554_v4, %v3570_v53  ;;  %v3581_v58 = vcombine.high %v3561_v11, %v3577_v36 }
 0x53a   :  { %v4089_v15 = vpack.i.bf16 %v3580_v1, %v3512_v57  ;;  %v4084_v29 = vpack.i.bf16 %v3579_v13, %v3511_v60  ;;  %v4099_v41 = vpack.i.bf16 %v3581_v58, %v3513_v54 }
 0x53c   :  { %4090 = vrot.lane.b32.xlu1 %v4089_v15, %s4309_s0  ;;  %4085 = vrot.lane.b32.xlu0 %v4084_v29, %s4313_s2 }
 0x540   :  { %4100 = vrot.lane.b32.xlu1 %v4099_v41, %s4312_s9  ;;  %4095 = vrot.lane.b32.xlu0 %v5275_v17, %s4312_s9 }
 0x573   :  { %v4076_v18 = vpop.permute.xlu1 %4075 }
 0x574   :  { %v4078_v25 = vunpack.i.h.bf16 %v4076_v18  ;;  %v4077_v28 = vunpack.i.l.bf16 %v4076_v18 }
 0x576   :  { %v3630_v17 = vsel %vm2124_vm1, %v3374_v47, %v4077_v28  ;;  %v3631_v8 = vsel %vm2124_vm1, %v3442_v55, %v4078_v25 }
 0x577   :  { %v4081_v7 = vpop.permute.xlu1 %4080 }
 0x578   :  { %v4083_v59 = vunpack.i.h.bf16 %v4081_v7  ;;  %v4082_v0 = vunpack.i.l.bf16 %v4081_v7 }
 0x57a   :  { %v3635_v14 = vsel %vm3634_vm3, %v3630_v17, %v4082_v0  ;;  %v3636_v62 = vsel %vm3634_vm3, %v3631_v8, %v4083_v59 }
 0x5ae   :  { %v4091_v51 = vpop.permute.xlu1 %4090  ;;  %v4086_v37 = vpop.permute.xlu0 %4085 }
 0x5af   :  { %v4088_v5 = vunpack.i.h.bf16 %v4086_v37  ;;  %v4087_v9 = vunpack.i.l.bf16 %v4086_v37  ;;  %v4093_v43 = vunpack.i.h.bf16 %v4091_v51  ;;  %v4092_v6 = vunpack.i.l.bf16 %v4091_v51 }
 0x5b1   :  { %v3632_v21 = vsel %vm2124_vm1, %v3510_v10, %v4087_v9  ;;  %v3633_v22 = vsel %vm2124_vm1, %v3578_v33, %v4088_v5 }
 0x5b2   :  { %v4101_v20 = vpop.permute.xlu1 %4100  ;;  %v4096_v44 = vpop.permute.xlu0 %4095  ;;  %v3637_v12 = vsel %vm3634_vm3, %v3632_v21, %v4092_v6  ;;  %v3638_v19 = vsel %vm3634_vm3, %v3633_v22, %v4093_v43 }
 0x5b3   :  { %v4103_v48 = vunpack.i.h.bf16 %v4101_v20  ;;  %v4102_v32 = vunpack.i.l.bf16 %v4101_v20  ;;  %v4098_v56 = vunpack.i.h.bf16 %v4096_v44  ;;  %v4097_v46 = vunpack.i.l.bf16 %v4096_v44 }
 0x5b5   :  { %v3642_v27 = vsel %vm3639_vm4, %v3637_v12, %v4102_v32  ;;  %v3643_v63 = vsel %vm3639_vm4, %v3638_v19, %v4103_v48  ;;  %v3640_v35 = vsel %vm3639_vm4, %v3635_v14, %v4097_v46  ;;  %v3641_v47 = vsel %vm3639_vm4, %v3636_v62, %v4098_v56 }
 0x5b6   :  { %v3645_v39 = vpack.c.bf16 %v3643_v63, %v3642_v27  ;;  %v3644_v23 = vpack.c.bf16 %v3641_v47, %v3640_v35 }
 0x5b8   :  { %4053 = vmatprep.mubr.bf16.mxu1 %v3644_v23 }
 0x5b9   :  { %4054 = vmatmul.mubr.bf16.vlgmr.msra.gmra.mrb[32].mxu1 %v3645_v39 }
 0x68c   :  { %v4055_v16 = vpop.f32.mrb[32].mxu1 }
 0x68d   :  { %v3760_v55 = vadd.f32 %v4055_v16, %v3860_v30  ;;  %v3751_v24 = vpop.f32.mrb[33].mxu1 }
 0x68e   :  { %v3752_v52 = vadd.f32 %v3860_v30, %v3751_v24  ;;  %v4056_v61 = vpop.f32.mrb[34].mxu1 }
 0x68f   :  { %3768 = vst [vmem:[#allocation8 + $0x10] sm:$0xff] %v3760_v55  ;;  %v3763_v3 = vadd.f32 %v4056_v61, %v3860_v30  ;;  %v3754_v2 = vpop.f32.mrb[35].mxu1 }
 0x690   :  { %3766 = vst [vmem:[#allocation8] sm:$0xff] %v3752_v52  ;;  %v3755_v31 = vadd.f32 %v3860_v30, %v3754_v2 }
 0x691   :  { %3769 = vst [vmem:[#allocation8 + $0x18] sm:$0xff] %v3763_v3 }
 0x692   :  { %3767 = vst [vmem:[#allocation8 + $0x8] sm:$0xff] %v3755_v31 }
 0x693   :  { %4285 = shalt.err (!%p4282_p0)
}
 0x694   :  { %s4286_s16 = scalar_lea.hbm %s5357_s5, 512 }
 0x695   :  { %p4287_p1 = scmp.ne.s32.totalorder %s5357_s5, %s4286_s16  ;;  %p4290_p2 = scmp.lt.u32.totalorder %s4286_s16, %s5357_s5 }
 0x697   :  { %p4292_p3 = pnand %p4290_p2, %p4287_p1 }
 0x699   :  { %4295 = shalt.err (!%p4292_p3)
}
 0x69a   :  { %3781 = dma.vmem_to_hbm [thread:$0]  %s3776_s13, 512, %s5357_s5, [#allocation4], %s4306_s1, %s4306_s1, %s4307_s17  }
 0x69b   :  { %4300 = dma.done.wait [#allocation4], 512  }
 0x69c   :  { %4301 = vsyncadd [#allocation4], 4294966784 }
 0x69d   :  { %3785 = vsyncpa [#allocation3], 1 }
 0x69e   :  { %3786 = vsyncpa [#allocation6], 1 }
 0x69f   :  { %3787 = vsyncpa [#allocation4], 1 }

</bundles_post_ra>
